<compile_context>
chip_gen: v6e
topology: v6e:2x2x1
jax: 0.10.0
libtpu: 0.0.40
codegen_flags: <defaults>
</compile_context>

<pallas_src>
import functools

import jax
import jax.numpy as jnp
from jax.experimental import pallas as pl
from jax.experimental.pallas import tpu as pltpu

_NEG_INF = -1e30  # bias value for lane-padded (non-logical) output columns


# ----------------------------- Pallas kernel ------------------------------ #
def _full_support_kernel(tok_ref,                 # SMEM int32 [B, L] (scalar prefetch)
                         w_ihT_ref,               # VMEM f32 [D, 4H]
                         w_hhT_ref,               # VMEM f32 [H, 4H]
                         b_lstm_ref,              # VMEM f32 [1, 4H]  (b_ih + b_hh)
                         w1_ref, b1_ref,          # VMEM f32 [H, HNP], [1, HNP] (lane padded)
                         w2_ref, b2_ref,          # VMEM f32 [HNP, CP], [1, CP] (lane padded)
                         o_ref,                   # VMEM f32 [B, CP]
                         *, vocab):
    B = o_ref.shape[0]
    H = w_hhT_ref.shape[0]
    L = tok_ref.shape[1]
    G = 4 * H                                     # gate width (= 128 here)

    b_lstm = b_lstm_ref[...]                      # [1, 4H]  (hoisted)
    w_hhT = w_hhT_ref[...]                        # [H, 4H]  (hoisted, VMEM-resident)

    # ---- Phase 1: input projections for ALL rows, off the serial chain ---- #
    # one_hot(state_r) @ W_ih^T == sum of L rows of W_ih^T selected by the
    # token ids (embedding gather-sum).  Computed before the recurrence so the
    # dependent SMEM->offset->VMEM-load chain never sits on the h-dependence.
    xp_rows = []
    for r in range(B):
        xp = b_lstm
        for l in range(L):
            tok = tok_ref[r, l]
            tok = jnp.minimum(jnp.maximum(tok, 0), vocab - 1)  # clamp: no VMEM OOB
            idx = l * vocab + tok
            xp = xp + w_ihT_ref[pl.ds(idx, 1), :]              # [1, 4H]
        xp_rows.append(xp)                                     # stays in vregs

    # ---- Gate-activation constants (built ONCE; broadcast is not CSE'd) --- #
    # PyTorch gate order i, f, g, o.  sigmoid(x) = 0.5 + 0.5*tanh(x/2), so one
    # full-width tanh with per-lane pre-scale + post-affine activates all four
    # gates: i/f/o lanes use (0.5, 0.5*t + 0.5); g lanes use (1.0, t).
    lane = jax.lax.broadcasted_iota(jnp.int32, (1, G), 1)
    is_g = jnp.logical_and(lane >= 2 * H, lane < 3 * H)
    pre_scale = jnp.where(is_g, 1.0, 0.5).astype(jnp.float32)   # [1, 4H]
    post_scale = pre_scale
    post_offset = jnp.where(is_g, 0.0, 0.5).astype(jnp.float32)

    # ---- Phase 2: backward LSTM recurrence (the only truly serial part) --- #
    # torch flips the batch, runs the LSTM, flips the output back.  Equivalent:
    # walk the original rows last -> first and keep each hidden state at its
    # original row index (flip folded away).  Hidden states stay in vregs.
    h = jnp.zeros((1, H), jnp.float32)
    c = jnp.zeros((1, H), jnp.float32)
    h_rows = [None] * B
    for s in range(B):
        r = B - 1 - s
        gates = xp_rows[r] + jnp.dot(h, w_hhT, preferred_element_type=jnp.float32)
        t = jnp.tanh(gates * pre_scale)                        # ONE full-width EUP push
        act = t * post_scale + post_offset                     # all 4 gates activated
        i_g = act[:, 0 * H:1 * H]
        f_g = act[:, 1 * H:2 * H]
        g_g = act[:, 2 * H:3 * H]
        o_g = act[:, 3 * H:4 * H]
        c = f_g * c + i_g * g_g
        h = o_g * jnp.tanh(c)
        h_rows[r] = h                                          # already "flipped back"

    hs = jnp.concatenate(h_rows, axis=0)                       # [B, H], vreg-resident

    # ---- Phase 3: policy head (Linear -> ReLU -> Linear) + log-softmax ---- #
    z = jnp.dot(hs, w1_ref[...], preferred_element_type=jnp.float32) + b1_ref[...]
    z = jnp.maximum(z, 0.0)                                    # [B, HNP] lane-dense
    logits = jnp.dot(z, w2_ref[...], preferred_element_type=jnp.float32) + b2_ref[...]
    # Padded class lanes carry a -1e30 bias -> exp underflows to exactly 0, so
    # the full-128-lane reductions equal the logical-C softmax.  (Invariant:
    # the row max must include padded lanes and logits must stay f32.)
    m = jnp.max(logits, axis=-1, keepdims=True)
    shifted = logits - m
    lse = jnp.log(jnp.sum(jnp.exp(shifted), axis=-1, keepdims=True))
    o_ref[...] = (shifted - lse).astype(o_ref.dtype)


# ------------------------------ Wrappers ----------------------------------- #
def prepare_params(raw_params, c_pad=128, hn_pad=128):
    """One-time (load-time) repack: transpose LSTM weights, fold the two LSTM
    biases, zero-pad the head hidden dim to 128 lanes, lane-pad the output
    head to a 128-lane slab (-1e30 padding bias)."""
    w_ih, w_hh, b_ih, b_hh, w1, b1, w2, b2 = raw_params
    HN, C = w2.shape
    cp = max(C, c_pad)
    hnp = max(HN, hn_pad)
    w_ihT = jnp.asarray(w_ih.T)                   # [D, 4H]
    w_hhT = jnp.asarray(w_hh.T)                   # [H, 4H]
    b_lstm = (b_ih + b_hh)[None, :]               # [1, 4H]
    w1p = jnp.pad(w1, ((0, 0), (0, hnp - HN)))            # zero cols -> z pad lanes = 0
    b1p = jnp.pad(b1, ((0, 0), (0, hnp - HN)))
    w2p = jnp.pad(w2, ((0, hnp - HN), (0, cp - C)))        # zero rows/cols: exact
    b2p = jnp.pad(b2, ((0, 0), (0, cp - C)), constant_values=_NEG_INF)
    return (w_ihT, w_hhT, b_lstm, w1p, b1p, w2p, b2p)


def full_support_forward(tokens, prep_params, *, vocab, n_classes):
    """tokens: int32 [B, L] token ids -> f32 [B, n_classes] log-probabilities."""
    w_ihT, w_hhT, b_lstm, w1p, b1p, w2p, b2p = prep_params
    B, L = tokens.shape
    H = w_hhT.shape[0]
    HNP = w1p.shape[1]
    CP = w2p.shape[1]

    flops = (B * 2 * H * 4 * H          # recurrent matmuls
             + B * L * 4 * H            # embedding gather-sums
             + 2 * B * H * HNP          # head layer 1
             + 2 * B * HNP * CP)        # head layer 2
    transcendentals = B * (4 * H + H) + B * CP
    bytes_accessed = 4 * (w_ihT.size + w_hhT.size + b_lstm.size + w1p.size
                          + b1p.size + w2p.size + b2p.size + B * CP) + 4 * tokens.size

    kernel = functools.partial(_full_support_kernel, vocab=vocab)
    out_padded = pl.pallas_call(
        kernel,
        out_shape=jax.ShapeDtypeStruct((B, CP), jnp.float32),
        grid_spec=pltpu.PrefetchScalarGridSpec(
            num_scalar_prefetch=1,              # token ids -> SMEM
            grid=(1,),                          # LSTM is sequential over the batch
            in_specs=[
                pl.BlockSpec(w_ihT.shape, lambda i, tok: (0, 0)),
                pl.BlockSpec(w_hhT.shape, lambda i, tok: (0, 0)),
                pl.BlockSpec(b_lstm.shape, lambda i, tok: (0, 0)),
                pl.BlockSpec(w1p.shape, lambda i, tok: (0, 0)),
                pl.BlockSpec(b1p.shape, lambda i, tok: (0, 0)),
                pl.BlockSpec(w2p.shape, lambda i, tok: (0, 0)),
                pl.BlockSpec(b2p.shape, lambda i, tok: (0, 0)),
            ],
            out_specs=pl.BlockSpec((B, CP), lambda i, tok: (0, 0)),
        ),
        compiler_params=pltpu.CompilerParams(
            dimension_semantics=("arbitrary",)),
        cost_estimate=pl.CostEstimate(flops=flops,
                                      transcendentals=transcendentals,
                                      bytes_accessed=bytes_accessed),
    )(tokens, w_ihT, w_hhT, b_lstm, w1p, b1p, w2p, b2p)
    return out_padded[:, :n_classes]


# ------------------------------ Reference ---------------------------------- #
def _reference(tokens, raw_params, vocab):
    """Pure-JAX re-implementation of the torch forward (flip -> LSTM -> flip
    -> net -> log_softmax), used as the correctness oracle."""
    w_ih, w_hh, b_ih, b_hh, w1, b1, w2, b2 = raw_params
    B, L = tokens.shape
    H = w_hh.shape[1]
    hp = jax.lax.Precision.HIGHEST

    def sigmoid(x):
        return 1.0 / (1.0 + jnp.exp(-x))

    inp = jax.nn.one_hot(tokens, vocab, dtype=jnp.float32).reshape(B, L * vocab)
    x = inp[::-1]                                    # torch.flip(inp, [0])

    def step(carry, xt):
        h, c = carry
        gates = (jnp.dot(xt, w_ih.T, precision=hp) + b_ih
                 + jnp.dot(h, w_hh.T, precision=hp) + b_hh)
        i, f, g, o = jnp.split(gates, 4, axis=-1)
        i = sigmoid(i); f = sigmoid(f); g = jnp.tanh(g); o = sigmoid(o)
        c = f * c + i * g
        h = o * jnp.tanh(c)
        return (h, c), h

    init = (jnp.zeros((H,), jnp.float32), jnp.zeros((H,), jnp.float32))
    _, hs = jax.lax.scan(step, init, x)
    lstm_out = hs[::-1]                              # flip back
    z = jnp.maximum(jnp.dot(lstm_out, w1, precision=hp) + b1, 0.0)
    logits = jnp.dot(z, w2, precision=hp) + b2
    return jax.nn.log_softmax(logits, axis=-1)


if __name__ == "__main__":
    key = jax.random.PRNGKey(0)

    # Small shapes: 8 states (the LSTM "sequence"), 4 tokens per state over a
    # vocab of 4 -> input_size D = 16; LSTM hidden H = 32; net hidden 32;
    # C = 8 action classes (lane-padded to 128 inside the kernel).
    B, L, V = 8, 4, 4
    D = L * V
    H, HN, C = 32, 32, 8

    ks = jax.random.split(key, 9)
    batch_states = jax.random.randint(ks[0], (B, L), 0, V, dtype=jnp.int32)

    # Synthetic parameters in PyTorch layout (LSTM gate order i, f, g, o).
    w_ih = jax.random.normal(ks[1], (4 * H, D), jnp.float32) * 0.1
    w_hh = jax.random.normal(ks[2], (4 * H, H), jnp.float32) * 0.1
    b_ih = jax.random.normal(ks[3], (4 * H,), jnp.float32) * 0.1
    b_hh = jax.random.normal(ks[4], (4 * H,), jnp.float32) * 0.1
    w1 = jax.random.normal(ks[5], (H, HN), jnp.float32) * 0.1
    b1 = jax.random.normal(ks[6], (1, HN), jnp.float32) * 0.1
    w2 = jax.random.normal(ks[7], (HN, C), jnp.float32) * 0.1
    b2 = jax.random.normal(ks[8], (1, C), jnp.float32) * 0.1

    raw_params = (w_ih, w_hh, b_ih, b_hh, w1, b1, w2, b2)
    prep = prepare_params(raw_params, c_pad=128, hn_pad=128)

    out = full_support_forward(batch_states, prep, vocab=V, n_classes=C)
    out = jax.block_until_ready(out)

    ref = _reference(batch_states, raw_params, V)
    assert out.shape == (B, C), out.shape
    assert jnp.allclose(out, ref, atol=1e-3, rtol=1e-3), "mismatch vs reference"
    # Rows of log-probabilities must sum to 1 in probability space.
    assert jnp.allclose(jnp.exp(out).sum(-1), 1.0, atol=1e-5)

    print("KERNEL_OK")
</pallas_src>

<mosaic_0001>
module attributes {stable_mosaic.version = 11 : i64} {
  func.func @_full_support_kernel(%arg0: i32, %arg1: memref<8x4xi32, #tpu.memory_space<smem>>, %arg2: memref<16x128xf32, #tpu.memory_space<vmem>>, %arg3: memref<32x128xf32, #tpu.memory_space<vmem>>, %arg4: memref<1x128xf32, #tpu.memory_space<vmem>>, %arg5: memref<32x128xf32, #tpu.memory_space<vmem>>, %arg6: memref<1x128xf32, #tpu.memory_space<vmem>>, %arg7: memref<128x128xf32, #tpu.memory_space<vmem>>, %arg8: memref<1x128xf32, #tpu.memory_space<vmem>>, %arg9: memref<8x128xf32, #tpu.memory_space<vmem>>) attributes {dimension_semantics = [#tpu.dimension_semantics<arbitrary>], iteration_bounds = array<i64: 1>, scalar_prefetch = 1 : i64, scratch_operands = 0 : i64, tpu.core_type = #tpu.core_type<tc>, window_params = [{pipeline_mode = #tpu.pipeline_mode<synchronous>, transform_indices = @transform_0, window_bounds = array<i64: 16, 128>}, {pipeline_mode = #tpu.pipeline_mode<synchronous>, transform_indices = @transform_1, window_bounds = array<i64: 32, 128>}, {pipeline_mode = #tpu.pipeline_mode<synchronous>, transform_indices = @transform_2, window_bounds = array<i64: 1, 128>}, {pipeline_mode = #tpu.pipeline_mode<synchronous>, transform_indices = @transform_3, window_bounds = array<i64: 32, 128>}, {pipeline_mode = #tpu.pipeline_mode<synchronous>, transform_indices = @transform_4, window_bounds = array<i64: 1, 128>}, {pipeline_mode = #tpu.pipeline_mode<synchronous>, transform_indices = @transform_5, window_bounds = array<i64: 128, 128>}, {pipeline_mode = #tpu.pipeline_mode<synchronous>, transform_indices = @transform_6, window_bounds = array<i64: 1, 128>}, {pipeline_mode = #tpu.pipeline_mode<synchronous>, transform_indices = @transform_7, window_bounds = array<i64: 8, 128>}]} {
    %c0 = arith.constant 0 : index
    %c0_0 = arith.constant 0 : index
    %0 = vector.load %arg4[%c0, %c0_0] : memref<1x128xf32, #tpu.memory_space<vmem>>, vector<1x128xf32>
    %c0_1 = arith.constant 0 : index
    %c0_2 = arith.constant 0 : index
    %1 = vector.load %arg3[%c0_1, %c0_2] : memref<32x128xf32, #tpu.memory_space<vmem>>, vector<32x128xf32>
    %c0_3 = arith.constant 0 : index
    %c0_4 = arith.constant 0 : index
    %2 = memref.load %arg1[%c0_3, %c0_4] : memref<8x4xi32, #tpu.memory_space<smem>>
    %c0_i32 = arith.constant 0 : i32
    %3 = arith.maxsi %2, %c0_i32 : i32
    %c3_i32 = arith.constant 3 : i32
    %4 = arith.minsi %3, %c3_i32 : i32
    %c0_i32_5 = arith.constant 0 : i32
    %5 = arith.addi %c0_i32_5, %4 : i32
    %6 = arith.index_cast %5 : i32 to index
    %c0_6 = arith.constant 0 : index
    %7 = vector.load %arg2[%6, %c0_6] : memref<16x128xf32, #tpu.memory_space<vmem>>, vector<1x128xf32>
    %8 = arith.addf %0, %7 : vector<1x128xf32>
    %c0_7 = arith.constant 0 : index
    %c1 = arith.constant 1 : index
    %9 = memref.load %arg1[%c0_7, %c1] : memref<8x4xi32, #tpu.memory_space<smem>>
    %c0_i32_8 = arith.constant 0 : i32
    %10 = arith.maxsi %9, %c0_i32_8 : i32
    %c3_i32_9 = arith.constant 3 : i32
    %11 = arith.minsi %10, %c3_i32_9 : i32
    %c4_i32 = arith.constant 4 : i32
    %12 = arith.addi %c4_i32, %11 : i32
    %13 = arith.index_cast %12 : i32 to index
    %c0_10 = arith.constant 0 : index
    %14 = vector.load %arg2[%13, %c0_10] : memref<16x128xf32, #tpu.memory_space<vmem>>, vector<1x128xf32>
    %15 = arith.addf %8, %14 : vector<1x128xf32>
    %c0_11 = arith.constant 0 : index
    %c2 = arith.constant 2 : index
    %16 = memref.load %arg1[%c0_11, %c2] : memref<8x4xi32, #tpu.memory_space<smem>>
    %c0_i32_12 = arith.constant 0 : i32
    %17 = arith.maxsi %16, %c0_i32_12 : i32
    %c3_i32_13 = arith.constant 3 : i32
    %18 = arith.minsi %17, %c3_i32_13 : i32
    %c8_i32 = arith.constant 8 : i32
    %19 = arith.addi %c8_i32, %18 : i32
    %20 = arith.index_cast %19 : i32 to index
    %c0_14 = arith.constant 0 : index
    %21 = vector.load %arg2[%20, %c0_14] : memref<16x128xf32, #tpu.memory_space<vmem>>, vector<1x128xf32>
    %22 = arith.addf %15, %21 : vector<1x128xf32>
    %c0_15 = arith.constant 0 : index
    %c3 = arith.constant 3 : index
    %23 = memref.load %arg1[%c0_15, %c3] : memref<8x4xi32, #tpu.memory_space<smem>>
    %c0_i32_16 = arith.constant 0 : i32
    %24 = arith.maxsi %23, %c0_i32_16 : i32
    %c3_i32_17 = arith.constant 3 : i32
    %25 = arith.minsi %24, %c3_i32_17 : i32
    %c12_i32 = arith.constant 12 : i32
    %26 = arith.addi %c12_i32, %25 : i32
    %27 = arith.index_cast %26 : i32 to index
    %c0_18 = arith.constant 0 : index
    %28 = vector.load %arg2[%27, %c0_18] : memref<16x128xf32, #tpu.memory_space<vmem>>, vector<1x128xf32>
    %29 = arith.addf %22, %28 : vector<1x128xf32>
    %c1_19 = arith.constant 1 : index
    %c0_20 = arith.constant 0 : index
    %30 = memref.load %arg1[%c1_19, %c0_20] : memref<8x4xi32, #tpu.memory_space<smem>>
    %c0_i32_21 = arith.constant 0 : i32
    %31 = arith.maxsi %30, %c0_i32_21 : i32
    %c3_i32_22 = arith.constant 3 : i32
    %32 = arith.minsi %31, %c3_i32_22 : i32
    %c0_i32_23 = arith.constant 0 : i32
    %33 = arith.addi %c0_i32_23, %32 : i32
    %34 = arith.index_cast %33 : i32 to index
    %c0_24 = arith.constant 0 : index
    %35 = vector.load %arg2[%34, %c0_24] : memref<16x128xf32, #tpu.memory_space<vmem>>, vector<1x128xf32>
    %36 = arith.addf %0, %35 : vector<1x128xf32>
    %c1_25 = arith.constant 1 : index
    %c1_26 = arith.constant 1 : index
    %37 = memref.load %arg1[%c1_25, %c1_26] : memref<8x4xi32, #tpu.memory_space<smem>>
    %c0_i32_27 = arith.constant 0 : i32
    %38 = arith.maxsi %37, %c0_i32_27 : i32
    %c3_i32_28 = arith.constant 3 : i32
    %39 = arith.minsi %38, %c3_i32_28 : i32
    %c4_i32_29 = arith.constant 4 : i32
    %40 = arith.addi %c4_i32_29, %39 : i32
    %41 = arith.index_cast %40 : i32 to index
    %c0_30 = arith.constant 0 : index
    %42 = vector.load %arg2[%41, %c0_30] : memref<16x128xf32, #tpu.memory_space<vmem>>, vector<1x128xf32>
    %43 = arith.addf %36, %42 : vector<1x128xf32>
    %c1_31 = arith.constant 1 : index
    %c2_32 = arith.constant 2 : index
    %44 = memref.load %arg1[%c1_31, %c2_32] : memref<8x4xi32, #tpu.memory_space<smem>>
    %c0_i32_33 = arith.constant 0 : i32
    %45 = arith.maxsi %44, %c0_i32_33 : i32
    %c3_i32_34 = arith.constant 3 : i32
    %46 = arith.minsi %45, %c3_i32_34 : i32
    %c8_i32_35 = arith.constant 8 : i32
    %47 = arith.addi %c8_i32_35, %46 : i32
    %48 = arith.index_cast %47 : i32 to index
    %c0_36 = arith.constant 0 : index
    %49 = vector.load %arg2[%48, %c0_36] : memref<16x128xf32, #tpu.memory_space<vmem>>, vector<1x128xf32>
    %50 = arith.addf %43, %49 : vector<1x128xf32>
    %c1_37 = arith.constant 1 : index
    %c3_38 = arith.constant 3 : index
    %51 = memref.load %arg1[%c1_37, %c3_38] : memref<8x4xi32, #tpu.memory_space<smem>>
    %c0_i32_39 = arith.constant 0 : i32
    %52 = arith.maxsi %51, %c0_i32_39 : i32
    %c3_i32_40 = arith.constant 3 : i32
    %53 = arith.minsi %52, %c3_i32_40 : i32
    %c12_i32_41 = arith.constant 12 : i32
    %54 = arith.addi %c12_i32_41, %53 : i32
    %55 = arith.index_cast %54 : i32 to index
    %c0_42 = arith.constant 0 : index
    %56 = vector.load %arg2[%55, %c0_42] : memref<16x128xf32, #tpu.memory_space<vmem>>, vector<1x128xf32>
    %57 = arith.addf %50, %56 : vector<1x128xf32>
    %c2_43 = arith.constant 2 : index
    %c0_44 = arith.constant 0 : index
    %58 = memref.load %arg1[%c2_43, %c0_44] : memref<8x4xi32, #tpu.memory_space<smem>>
    %c0_i32_45 = arith.constant 0 : i32
    %59 = arith.maxsi %58, %c0_i32_45 : i32
    %c3_i32_46 = arith.constant 3 : i32
    %60 = arith.minsi %59, %c3_i32_46 : i32
    %c0_i32_47 = arith.constant 0 : i32
    %61 = arith.addi %c0_i32_47, %60 : i32
    %62 = arith.index_cast %61 : i32 to index
    %c0_48 = arith.constant 0 : index
    %63 = vector.load %arg2[%62, %c0_48] : memref<16x128xf32, #tpu.memory_space<vmem>>, vector<1x128xf32>
    %64 = arith.addf %0, %63 : vector<1x128xf32>
    %c2_49 = arith.constant 2 : index
    %c1_50 = arith.constant 1 : index
    %65 = memref.load %arg1[%c2_49, %c1_50] : memref<8x4xi32, #tpu.memory_space<smem>>
    %c0_i32_51 = arith.constant 0 : i32
    %66 = arith.maxsi %65, %c0_i32_51 : i32
    %c3_i32_52 = arith.constant 3 : i32
    %67 = arith.minsi %66, %c3_i32_52 : i32
    %c4_i32_53 = arith.constant 4 : i32
    %68 = arith.addi %c4_i32_53, %67 : i32
    %69 = arith.index_cast %68 : i32 to index
    %c0_54 = arith.constant 0 : index
    %70 = vector.load %arg2[%69, %c0_54] : memref<16x128xf32, #tpu.memory_space<vmem>>, vector<1x128xf32>
    %71 = arith.addf %64, %70 : vector<1x128xf32>
    %c2_55 = arith.constant 2 : index
    %c2_56 = arith.constant 2 : index
    %72 = memref.load %arg1[%c2_55, %c2_56] : memref<8x4xi32, #tpu.memory_space<smem>>
    %c0_i32_57 = arith.constant 0 : i32
    %73 = arith.maxsi %72, %c0_i32_57 : i32
    %c3_i32_58 = arith.constant 3 : i32
    %74 = arith.minsi %73, %c3_i32_58 : i32
    %c8_i32_59 = arith.constant 8 : i32
    %75 = arith.addi %c8_i32_59, %74 : i32
    %76 = arith.index_cast %75 : i32 to index
    %c0_60 = arith.constant 0 : index
    %77 = vector.load %arg2[%76, %c0_60] : memref<16x128xf32, #tpu.memory_space<vmem>>, vector<1x128xf32>
    %78 = arith.addf %71, %77 : vector<1x128xf32>
    %c2_61 = arith.constant 2 : index
    %c3_62 = arith.constant 3 : index
    %79 = memref.load %arg1[%c2_61, %c3_62] : memref<8x4xi32, #tpu.memory_space<smem>>
    %c0_i32_63 = arith.constant 0 : i32
    %80 = arith.maxsi %79, %c0_i32_63 : i32
    %c3_i32_64 = arith.constant 3 : i32
    %81 = arith.minsi %80, %c3_i32_64 : i32
    %c12_i32_65 = arith.constant 12 : i32
    %82 = arith.addi %c12_i32_65, %81 : i32
    %83 = arith.index_cast %82 : i32 to index
    %c0_66 = arith.constant 0 : index
    %84 = vector.load %arg2[%83, %c0_66] : memref<16x128xf32, #tpu.memory_space<vmem>>, vector<1x128xf32>
    %85 = arith.addf %78, %84 : vector<1x128xf32>
    %c3_67 = arith.constant 3 : index
    %c0_68 = arith.constant 0 : index
    %86 = memref.load %arg1[%c3_67, %c0_68] : memref<8x4xi32, #tpu.memory_space<smem>>
    %c0_i32_69 = arith.constant 0 : i32
    %87 = arith.maxsi %86, %c0_i32_69 : i32
    %c3_i32_70 = arith.constant 3 : i32
    %88 = arith.minsi %87, %c3_i32_70 : i32
    %c0_i32_71 = arith.constant 0 : i32
    %89 = arith.addi %c0_i32_71, %88 : i32
    %90 = arith.index_cast %89 : i32 to index
    %c0_72 = arith.constant 0 : index
    %91 = vector.load %arg2[%90, %c0_72] : memref<16x128xf32, #tpu.memory_space<vmem>>, vector<1x128xf32>
    %92 = arith.addf %0, %91 : vector<1x128xf32>
    %c3_73 = arith.constant 3 : index
    %c1_74 = arith.constant 1 : index
    %93 = memref.load %arg1[%c3_73, %c1_74] : memref<8x4xi32, #tpu.memory_space<smem>>
    %c0_i32_75 = arith.constant 0 : i32
    %94 = arith.maxsi %93, %c0_i32_75 : i32
    %c3_i32_76 = arith.constant 3 : i32
    %95 = arith.minsi %94, %c3_i32_76 : i32
    %c4_i32_77 = arith.constant 4 : i32
    %96 = arith.addi %c4_i32_77, %95 : i32
    %97 = arith.index_cast %96 : i32 to index
    %c0_78 = arith.constant 0 : index
    %98 = vector.load %arg2[%97, %c0_78] : memref<16x128xf32, #tpu.memory_space<vmem>>, vector<1x128xf32>
    %99 = arith.addf %92, %98 : vector<1x128xf32>
    %c3_79 = arith.constant 3 : index
    %c2_80 = arith.constant 2 : index
    %100 = memref.load %arg1[%c3_79, %c2_80] : memref<8x4xi32, #tpu.memory_space<smem>>
    %c0_i32_81 = arith.constant 0 : i32
    %101 = arith.maxsi %100, %c0_i32_81 : i32
    %c3_i32_82 = arith.constant 3 : i32
    %102 = arith.minsi %101, %c3_i32_82 : i32
    %c8_i32_83 = arith.constant 8 : i32
    %103 = arith.addi %c8_i32_83, %102 : i32
    %104 = arith.index_cast %103 : i32 to index
    %c0_84 = arith.constant 0 : index
    %105 = vector.load %arg2[%104, %c0_84] : memref<16x128xf32, #tpu.memory_space<vmem>>, vector<1x128xf32>
    %106 = arith.addf %99, %105 : vector<1x128xf32>
    %c3_85 = arith.constant 3 : index
    %c3_86 = arith.constant 3 : index
    %107 = memref.load %arg1[%c3_85, %c3_86] : memref<8x4xi32, #tpu.memory_space<smem>>
    %c0_i32_87 = arith.constant 0 : i32
    %108 = arith.maxsi %107, %c0_i32_87 : i32
    %c3_i32_88 = arith.constant 3 : i32
    %109 = arith.minsi %108, %c3_i32_88 : i32
    %c12_i32_89 = arith.constant 12 : i32
    %110 = arith.addi %c12_i32_89, %109 : i32
    %111 = arith.index_cast %110 : i32 to index
    %c0_90 = arith.constant 0 : index
    %112 = vector.load %arg2[%111, %c0_90] : memref<16x128xf32, #tpu.memory_space<vmem>>, vector<1x128xf32>
    %113 = arith.addf %106, %112 : vector<1x128xf32>
    %c4 = arith.constant 4 : index
    %c0_91 = arith.constant 0 : index
    %114 = memref.load %arg1[%c4, %c0_91] : memref<8x4xi32, #tpu.memory_space<smem>>
    %c0_i32_92 = arith.constant 0 : i32
    %115 = arith.maxsi %114, %c0_i32_92 : i32
    %c3_i32_93 = arith.constant 3 : i32
    %116 = arith.minsi %115, %c3_i32_93 : i32
    %c0_i32_94 = arith.constant 0 : i32
    %117 = arith.addi %c0_i32_94, %116 : i32
    %118 = arith.index_cast %117 : i32 to index
    %c0_95 = arith.constant 0 : index
    %119 = vector.load %arg2[%118, %c0_95] : memref<16x128xf32, #tpu.memory_space<vmem>>, vector<1x128xf32>
    %120 = arith.addf %0, %119 : vector<1x128xf32>
    %c4_96 = arith.constant 4 : index
    %c1_97 = arith.constant 1 : index
    %121 = memref.load %arg1[%c4_96, %c1_97] : memref<8x4xi32, #tpu.memory_space<smem>>
    %c0_i32_98 = arith.constant 0 : i32
    %122 = arith.maxsi %121, %c0_i32_98 : i32
    %c3_i32_99 = arith.constant 3 : i32
    %123 = arith.minsi %122, %c3_i32_99 : i32
    %c4_i32_100 = arith.constant 4 : i32
    %124 = arith.addi %c4_i32_100, %123 : i32
    %125 = arith.index_cast %124 : i32 to index
    %c0_101 = arith.constant 0 : index
    %126 = vector.load %arg2[%125, %c0_101] : memref<16x128xf32, #tpu.memory_space<vmem>>, vector<1x128xf32>
    %127 = arith.addf %120, %126 : vector<1x128xf32>
    %c4_102 = arith.constant 4 : index
    %c2_103 = arith.constant 2 : index
    %128 = memref.load %arg1[%c4_102, %c2_103] : memref<8x4xi32, #tpu.memory_space<smem>>
    %c0_i32_104 = arith.constant 0 : i32
    %129 = arith.maxsi %128, %c0_i32_104 : i32
    %c3_i32_105 = arith.constant 3 : i32
    %130 = arith.minsi %129, %c3_i32_105 : i32
    %c8_i32_106 = arith.constant 8 : i32
    %131 = arith.addi %c8_i32_106, %130 : i32
    %132 = arith.index_cast %131 : i32 to index
    %c0_107 = arith.constant 0 : index
    %133 = vector.load %arg2[%132, %c0_107] : memref<16x128xf32, #tpu.memory_space<vmem>>, vector<1x128xf32>
    %134 = arith.addf %127, %133 : vector<1x128xf32>
    %c4_108 = arith.constant 4 : index
    %c3_109 = arith.constant 3 : index
    %135 = memref.load %arg1[%c4_108, %c3_109] : memref<8x4xi32, #tpu.memory_space<smem>>
    %c0_i32_110 = arith.constant 0 : i32
    %136 = arith.maxsi %135, %c0_i32_110 : i32
    %c3_i32_111 = arith.constant 3 : i32
    %137 = arith.minsi %136, %c3_i32_111 : i32
    %c12_i32_112 = arith.constant 12 : i32
    %138 = arith.addi %c12_i32_112, %137 : i32
    %139 = arith.index_cast %138 : i32 to index
    %c0_113 = arith.constant 0 : index
    %140 = vector.load %arg2[%139, %c0_113] : memref<16x128xf32, #tpu.memory_space<vmem>>, vector<1x128xf32>
    %141 = arith.addf %134, %140 : vector<1x128xf32>
    %c5 = arith.constant 5 : index
    %c0_114 = arith.constant 0 : index
    %142 = memref.load %arg1[%c5, %c0_114] : memref<8x4xi32, #tpu.memory_space<smem>>
    %c0_i32_115 = arith.constant 0 : i32
    %143 = arith.maxsi %142, %c0_i32_115 : i32
    %c3_i32_116 = arith.constant 3 : i32
    %144 = arith.minsi %143, %c3_i32_116 : i32
    %c0_i32_117 = arith.constant 0 : i32
    %145 = arith.addi %c0_i32_117, %144 : i32
    %146 = arith.index_cast %145 : i32 to index
    %c0_118 = arith.constant 0 : index
    %147 = vector.load %arg2[%146, %c0_118] : memref<16x128xf32, #tpu.memory_space<vmem>>, vector<1x128xf32>
    %148 = arith.addf %0, %147 : vector<1x128xf32>
    %c5_119 = arith.constant 5 : index
    %c1_120 = arith.constant 1 : index
    %149 = memref.load %arg1[%c5_119, %c1_120] : memref<8x4xi32, #tpu.memory_space<smem>>
    %c0_i32_121 = arith.constant 0 : i32
    %150 = arith.maxsi %149, %c0_i32_121 : i32
    %c3_i32_122 = arith.constant 3 : i32
    %151 = arith.minsi %150, %c3_i32_122 : i32
    %c4_i32_123 = arith.constant 4 : i32
    %152 = arith.addi %c4_i32_123, %151 : i32
    %153 = arith.index_cast %152 : i32 to index
    %c0_124 = arith.constant 0 : index
    %154 = vector.load %arg2[%153, %c0_124] : memref<16x128xf32, #tpu.memory_space<vmem>>, vector<1x128xf32>
    %155 = arith.addf %148, %154 : vector<1x128xf32>
    %c5_125 = arith.constant 5 : index
    %c2_126 = arith.constant 2 : index
    %156 = memref.load %arg1[%c5_125, %c2_126] : memref<8x4xi32, #tpu.memory_space<smem>>
    %c0_i32_127 = arith.constant 0 : i32
    %157 = arith.maxsi %156, %c0_i32_127 : i32
    %c3_i32_128 = arith.constant 3 : i32
    %158 = arith.minsi %157, %c3_i32_128 : i32
    %c8_i32_129 = arith.constant 8 : i32
    %159 = arith.addi %c8_i32_129, %158 : i32
    %160 = arith.index_cast %159 : i32 to index
    %c0_130 = arith.constant 0 : index
    %161 = vector.load %arg2[%160, %c0_130] : memref<16x128xf32, #tpu.memory_space<vmem>>, vector<1x128xf32>
    %162 = arith.addf %155, %161 : vector<1x128xf32>
    %c5_131 = arith.constant 5 : index
    %c3_132 = arith.constant 3 : index
    %163 = memref.load %arg1[%c5_131, %c3_132] : memref<8x4xi32, #tpu.memory_space<smem>>
    %c0_i32_133 = arith.constant 0 : i32
    %164 = arith.maxsi %163, %c0_i32_133 : i32
    %c3_i32_134 = arith.constant 3 : i32
    %165 = arith.minsi %164, %c3_i32_134 : i32
    %c12_i32_135 = arith.constant 12 : i32
    %166 = arith.addi %c12_i32_135, %165 : i32
    %167 = arith.index_cast %166 : i32 to index
    %c0_136 = arith.constant 0 : index
    %168 = vector.load %arg2[%167, %c0_136] : memref<16x128xf32, #tpu.memory_space<vmem>>, vector<1x128xf32>
    %169 = arith.addf %162, %168 : vector<1x128xf32>
    %c6 = arith.constant 6 : index
    %c0_137 = arith.constant 0 : index
    %170 = memref.load %arg1[%c6, %c0_137] : memref<8x4xi32, #tpu.memory_space<smem>>
    %c0_i32_138 = arith.constant 0 : i32
    %171 = arith.maxsi %170, %c0_i32_138 : i32
    %c3_i32_139 = arith.constant 3 : i32
    %172 = arith.minsi %171, %c3_i32_139 : i32
    %c0_i32_140 = arith.constant 0 : i32
    %173 = arith.addi %c0_i32_140, %172 : i32
    %174 = arith.index_cast %173 : i32 to index
    %c0_141 = arith.constant 0 : index
    %175 = vector.load %arg2[%174, %c0_141] : memref<16x128xf32, #tpu.memory_space<vmem>>, vector<1x128xf32>
    %176 = arith.addf %0, %175 : vector<1x128xf32>
    %c6_142 = arith.constant 6 : index
    %c1_143 = arith.constant 1 : index
    %177 = memref.load %arg1[%c6_142, %c1_143] : memref<8x4xi32, #tpu.memory_space<smem>>
    %c0_i32_144 = arith.constant 0 : i32
    %178 = arith.maxsi %177, %c0_i32_144 : i32
    %c3_i32_145 = arith.constant 3 : i32
    %179 = arith.minsi %178, %c3_i32_145 : i32
    %c4_i32_146 = arith.constant 4 : i32
    %180 = arith.addi %c4_i32_146, %179 : i32
    %181 = arith.index_cast %180 : i32 to index
    %c0_147 = arith.constant 0 : index
    %182 = vector.load %arg2[%181, %c0_147] : memref<16x128xf32, #tpu.memory_space<vmem>>, vector<1x128xf32>
    %183 = arith.addf %176, %182 : vector<1x128xf32>
    %c6_148 = arith.constant 6 : index
    %c2_149 = arith.constant 2 : index
    %184 = memref.load %arg1[%c6_148, %c2_149] : memref<8x4xi32, #tpu.memory_space<smem>>
    %c0_i32_150 = arith.constant 0 : i32
    %185 = arith.maxsi %184, %c0_i32_150 : i32
    %c3_i32_151 = arith.constant 3 : i32
    %186 = arith.minsi %185, %c3_i32_151 : i32
    %c8_i32_152 = arith.constant 8 : i32
    %187 = arith.addi %c8_i32_152, %186 : i32
    %188 = arith.index_cast %187 : i32 to index
    %c0_153 = arith.constant 0 : index
    %189 = vector.load %arg2[%188, %c0_153] : memref<16x128xf32, #tpu.memory_space<vmem>>, vector<1x128xf32>
    %190 = arith.addf %183, %189 : vector<1x128xf32>
    %c6_154 = arith.constant 6 : index
    %c3_155 = arith.constant 3 : index
    %191 = memref.load %arg1[%c6_154, %c3_155] : memref<8x4xi32, #tpu.memory_space<smem>>
    %c0_i32_156 = arith.constant 0 : i32
    %192 = arith.maxsi %191, %c0_i32_156 : i32
    %c3_i32_157 = arith.constant 3 : i32
    %193 = arith.minsi %192, %c3_i32_157 : i32
    %c12_i32_158 = arith.constant 12 : i32
    %194 = arith.addi %c12_i32_158, %193 : i32
    %195 = arith.index_cast %194 : i32 to index
    %c0_159 = arith.constant 0 : index
    %196 = vector.load %arg2[%195, %c0_159] : memref<16x128xf32, #tpu.memory_space<vmem>>, vector<1x128xf32>
    %197 = arith.addf %190, %196 : vector<1x128xf32>
    %c7 = arith.constant 7 : index
    %c0_160 = arith.constant 0 : index
    %198 = memref.load %arg1[%c7, %c0_160] : memref<8x4xi32, #tpu.memory_space<smem>>
    %c0_i32_161 = arith.constant 0 : i32
    %199 = arith.maxsi %198, %c0_i32_161 : i32
    %c3_i32_162 = arith.constant 3 : i32
    %200 = arith.minsi %199, %c3_i32_162 : i32
    %c0_i32_163 = arith.constant 0 : i32
    %201 = arith.addi %c0_i32_163, %200 : i32
    %202 = arith.index_cast %201 : i32 to index
    %c0_164 = arith.constant 0 : index
    %203 = vector.load %arg2[%202, %c0_164] : memref<16x128xf32, #tpu.memory_space<vmem>>, vector<1x128xf32>
    %204 = arith.addf %0, %203 : vector<1x128xf32>
    %c7_165 = arith.constant 7 : index
    %c1_166 = arith.constant 1 : index
    %205 = memref.load %arg1[%c7_165, %c1_166] : memref<8x4xi32, #tpu.memory_space<smem>>
    %c0_i32_167 = arith.constant 0 : i32
    %206 = arith.maxsi %205, %c0_i32_167 : i32
    %c3_i32_168 = arith.constant 3 : i32
    %207 = arith.minsi %206, %c3_i32_168 : i32
    %c4_i32_169 = arith.constant 4 : i32
    %208 = arith.addi %c4_i32_169, %207 : i32
    %209 = arith.index_cast %208 : i32 to index
    %c0_170 = arith.constant 0 : index
    %210 = vector.load %arg2[%209, %c0_170] : memref<16x128xf32, #tpu.memory_space<vmem>>, vector<1x128xf32>
    %211 = arith.addf %204, %210 : vector<1x128xf32>
    %c7_171 = arith.constant 7 : index
    %c2_172 = arith.constant 2 : index
    %212 = memref.load %arg1[%c7_171, %c2_172] : memref<8x4xi32, #tpu.memory_space<smem>>
    %c0_i32_173 = arith.constant 0 : i32
    %213 = arith.maxsi %212, %c0_i32_173 : i32
    %c3_i32_174 = arith.constant 3 : i32
    %214 = arith.minsi %213, %c3_i32_174 : i32
    %c8_i32_175 = arith.constant 8 : i32
    %215 = arith.addi %c8_i32_175, %214 : i32
    %216 = arith.index_cast %215 : i32 to index
    %c0_176 = arith.constant 0 : index
    %217 = vector.load %arg2[%216, %c0_176] : memref<16x128xf32, #tpu.memory_space<vmem>>, vector<1x128xf32>
    %218 = arith.addf %211, %217 : vector<1x128xf32>
    %c7_177 = arith.constant 7 : index
    %c3_178 = arith.constant 3 : index
    %219 = memref.load %arg1[%c7_177, %c3_178] : memref<8x4xi32, #tpu.memory_space<smem>>
    %c0_i32_179 = arith.constant 0 : i32
    %220 = arith.maxsi %219, %c0_i32_179 : i32
    %c3_i32_180 = arith.constant 3 : i32
    %221 = arith.minsi %220, %c3_i32_180 : i32
    %c12_i32_181 = arith.constant 12 : i32
    %222 = arith.addi %c12_i32_181, %221 : i32
    %223 = arith.index_cast %222 : i32 to index
    %c0_182 = arith.constant 0 : index
    %224 = vector.load %arg2[%223, %c0_182] : memref<16x128xf32, #tpu.memory_space<vmem>>, vector<1x128xf32>
    %225 = arith.addf %218, %224 : vector<1x128xf32>
    %226 = tpu.iota {dimensions = array<i32: 1>} : vector<1x128xi32>
    %c64_i32 = arith.constant 64 : i32
    %227 = vector.broadcast %c64_i32 : i32 to vector<1x128xi32>
    %228 = arith.cmpi sge, %226, %227 : vector<1x128xi32>
    %c96_i32 = arith.constant 96 : i32
    %229 = vector.broadcast %c96_i32 : i32 to vector<1x128xi32>
    %230 = arith.cmpi slt, %226, %229 : vector<1x128xi32>
    %231 = arith.andi %228, %230 : vector<1x128xi1>
    %cst = arith.constant 1.000000e+00 : f32
    %cst_183 = arith.constant 5.000000e-01 : f32
    %232 = vector.broadcast %cst : f32 to vector<1x128xf32>
    %233 = vector.broadcast %cst_183 : f32 to vector<1x128xf32>
    %234 = arith.select %231, %232, %233 : vector<1x128xi1>, vector<1x128xf32>
    %cst_184 = arith.constant 0.000000e+00 : f32
    %cst_185 = arith.constant 5.000000e-01 : f32
    %235 = vector.broadcast %cst_184 : f32 to vector<1x128xf32>
    %236 = vector.broadcast %cst_185 : f32 to vector<1x128xf32>
    %237 = arith.select %231, %235, %236 : vector<1x128xi1>, vector<1x128xf32>
    %cst_186 = arith.constant 0.000000e+00 : f32
    %238 = vector.broadcast %cst_186 : f32 to vector<1x32xf32>
    %cst_187 = arith.constant 0.000000e+00 : f32
    %239 = vector.broadcast %cst_187 : f32 to vector<1x32xf32>
    %cst_188 = arith.constant dense<0.000000e+00> : vector<1x128xf32>
    %240 = tpu.matmul %238, %1, %cst_188 {dimension_numbers = #tpu.dot_dimension_numbers<[1], [0], [0], [1], [0, 0, 1, 1], [], []>} : vector<1x32xf32>, vector<32x128xf32>, vector<1x128xf32> -> vector<1x128xf32>
    %241 = arith.addf %225, %240 : vector<1x128xf32>
    %242 = arith.mulf %241, %234 : vector<1x128xf32>
    %243 = math.tanh %242 : vector<1x128xf32>
    %244 = arith.mulf %243, %234 : vector<1x128xf32>
    %245 = arith.addf %244, %237 : vector<1x128xf32>
    %246 = vector.extract_strided_slice %245 {offsets = [0, 0], sizes = [1, 32], strides = [1, 1]} : vector<1x128xf32> to vector<1x32xf32>
    %247 = vector.extract_strided_slice %245 {offsets = [0, 32], sizes = [1, 32], strides = [1, 1]} : vector<1x128xf32> to vector<1x32xf32>
    %248 = vector.extract_strided_slice %245 {offsets = [0, 64], sizes = [1, 32], strides = [1, 1]} : vector<1x128xf32> to vector<1x32xf32>
    %249 = vector.extract_strided_slice %245 {offsets = [0, 96], sizes = [1, 32], strides = [1, 1]} : vector<1x128xf32> to vector<1x32xf32>
    %250 = arith.mulf %247, %239 : vector<1x32xf32>
    %251 = arith.mulf %246, %248 : vector<1x32xf32>
    %252 = arith.addf %250, %251 : vector<1x32xf32>
    %253 = math.tanh %252 : vector<1x32xf32>
    %254 = arith.mulf %249, %253 : vector<1x32xf32>
    %cst_189 = arith.constant dense<0.000000e+00> : vector<1x128xf32>
    %255 = tpu.matmul %254, %1, %cst_189 {dimension_numbers = #tpu.dot_dimension_numbers<[1], [0], [0], [1], [0, 0, 1, 1], [], []>} : vector<1x32xf32>, vector<32x128xf32>, vector<1x128xf32> -> vector<1x128xf32>
    %256 = arith.addf %197, %255 : vector<1x128xf32>
    %257 = arith.mulf %256, %234 : vector<1x128xf32>
    %258 = math.tanh %257 : vector<1x128xf32>
    %259 = arith.mulf %258, %234 : vector<1x128xf32>
    %260 = arith.addf %259, %237 : vector<1x128xf32>
    %261 = vector.extract_strided_slice %260 {offsets = [0, 0], sizes = [1, 32], strides = [1, 1]} : vector<1x128xf32> to vector<1x32xf32>
    %262 = vector.extract_strided_slice %260 {offsets = [0, 32], sizes = [1, 32], strides = [1, 1]} : vector<1x128xf32> to vector<1x32xf32>
    %263 = vector.extract_strided_slice %260 {offsets = [0, 64], sizes = [1, 32], strides = [1, 1]} : vector<1x128xf32> to vector<1x32xf32>
    %264 = vector.extract_strided_slice %260 {offsets = [0, 96], sizes = [1, 32], strides = [1, 1]} : vector<1x128xf32> to vector<1x32xf32>
    %265 = arith.mulf %262, %252 : vector<1x32xf32>
    %266 = arith.mulf %261, %263 : vector<1x32xf32>
    %267 = arith.addf %265, %266 : vector<1x32xf32>
    %268 = math.tanh %267 : vector<1x32xf32>
    %269 = arith.mulf %264, %268 : vector<1x32xf32>
    %cst_190 = arith.constant dense<0.000000e+00> : vector<1x128xf32>
    %270 = tpu.matmul %269, %1, %cst_190 {dimension_numbers = #tpu.dot_dimension_numbers<[1], [0], [0], [1], [0, 0, 1, 1], [], []>} : vector<1x32xf32>, vector<32x128xf32>, vector<1x128xf32> -> vector<1x128xf32>
    %271 = arith.addf %169, %270 : vector<1x128xf32>
    %272 = arith.mulf %271, %234 : vector<1x128xf32>
    %273 = math.tanh %272 : vector<1x128xf32>
    %274 = arith.mulf %273, %234 : vector<1x128xf32>
    %275 = arith.addf %274, %237 : vector<1x128xf32>
    %276 = vector.extract_strided_slice %275 {offsets = [0, 0], sizes = [1, 32], strides = [1, 1]} : vector<1x128xf32> to vector<1x32xf32>
    %277 = vector.extract_strided_slice %275 {offsets = [0, 32], sizes = [1, 32], strides = [1, 1]} : vector<1x128xf32> to vector<1x32xf32>
    %278 = vector.extract_strided_slice %275 {offsets = [0, 64], sizes = [1, 32], strides = [1, 1]} : vector<1x128xf32> to vector<1x32xf32>
    %279 = vector.extract_strided_slice %275 {offsets = [0, 96], sizes = [1, 32], strides = [1, 1]} : vector<1x128xf32> to vector<1x32xf32>
    %280 = arith.mulf %277, %267 : vector<1x32xf32>
    %281 = arith.mulf %276, %278 : vector<1x32xf32>
    %282 = arith.addf %280, %281 : vector<1x32xf32>
    %283 = math.tanh %282 : vector<1x32xf32>
    %284 = arith.mulf %279, %283 : vector<1x32xf32>
    %cst_191 = arith.constant dense<0.000000e+00> : vector<1x128xf32>
    %285 = tpu.matmul %284, %1, %cst_191 {dimension_numbers = #tpu.dot_dimension_numbers<[1], [0], [0], [1], [0, 0, 1, 1], [], []>} : vector<1x32xf32>, vector<32x128xf32>, vector<1x128xf32> -> vector<1x128xf32>
    %286 = arith.addf %141, %285 : vector<1x128xf32>
    %287 = arith.mulf %286, %234 : vector<1x128xf32>
    %288 = math.tanh %287 : vector<1x128xf32>
    %289 = arith.mulf %288, %234 : vector<1x128xf32>
    %290 = arith.addf %289, %237 : vector<1x128xf32>
    %291 = vector.extract_strided_slice %290 {offsets = [0, 0], sizes = [1, 32], strides = [1, 1]} : vector<1x128xf32> to vector<1x32xf32>
    %292 = vector.extract_strided_slice %290 {offsets = [0, 32], sizes = [1, 32], strides = [1, 1]} : vector<1x128xf32> to vector<1x32xf32>
    %293 = vector.extract_strided_slice %290 {offsets = [0, 64], sizes = [1, 32], strides = [1, 1]} : vector<1x128xf32> to vector<1x32xf32>
    %294 = vector.extract_strided_slice %290 {offsets = [0, 96], sizes = [1, 32], strides = [1, 1]} : vector<1x128xf32> to vector<1x32xf32>
    %295 = arith.mulf %292, %282 : vector<1x32xf32>
    %296 = arith.mulf %291, %293 : vector<1x32xf32>
    %297 = arith.addf %295, %296 : vector<1x32xf32>
    %298 = math.tanh %297 : vector<1x32xf32>
    %299 = arith.mulf %294, %298 : vector<1x32xf32>
    %cst_192 = arith.constant dense<0.000000e+00> : vector<1x128xf32>
    %300 = tpu.matmul %299, %1, %cst_192 {dimension_numbers = #tpu.dot_dimension_numbers<[1], [0], [0], [1], [0, 0, 1, 1], [], []>} : vector<1x32xf32>, vector<32x128xf32>, vector<1x128xf32> -> vector<1x128xf32>
    %301 = arith.addf %113, %300 : vector<1x128xf32>
    %302 = arith.mulf %301, %234 : vector<1x128xf32>
    %303 = math.tanh %302 : vector<1x128xf32>
    %304 = arith.mulf %303, %234 : vector<1x128xf32>
    %305 = arith.addf %304, %237 : vector<1x128xf32>
    %306 = vector.extract_strided_slice %305 {offsets = [0, 0], sizes = [1, 32], strides = [1, 1]} : vector<1x128xf32> to vector<1x32xf32>
    %307 = vector.extract_strided_slice %305 {offsets = [0, 32], sizes = [1, 32], strides = [1, 1]} : vector<1x128xf32> to vector<1x32xf32>
    %308 = vector.extract_strided_slice %305 {offsets = [0, 64], sizes = [1, 32], strides = [1, 1]} : vector<1x128xf32> to vector<1x32xf32>
    %309 = vector.extract_strided_slice %305 {offsets = [0, 96], sizes = [1, 32], strides = [1, 1]} : vector<1x128xf32> to vector<1x32xf32>
    %310 = arith.mulf %307, %297 : vector<1x32xf32>
    %311 = arith.mulf %306, %308 : vector<1x32xf32>
    %312 = arith.addf %310, %311 : vector<1x32xf32>
    %313 = math.tanh %312 : vector<1x32xf32>
    %314 = arith.mulf %309, %313 : vector<1x32xf32>
    %cst_193 = arith.constant dense<0.000000e+00> : vector<1x128xf32>
    %315 = tpu.matmul %314, %1, %cst_193 {dimension_numbers = #tpu.dot_dimension_numbers<[1], [0], [0], [1], [0, 0, 1, 1], [], []>} : vector<1x32xf32>, vector<32x128xf32>, vector<1x128xf32> -> vector<1x128xf32>
    %316 = arith.addf %85, %315 : vector<1x128xf32>
    %317 = arith.mulf %316, %234 : vector<1x128xf32>
    %318 = math.tanh %317 : vector<1x128xf32>
    %319 = arith.mulf %318, %234 : vector<1x128xf32>
    %320 = arith.addf %319, %237 : vector<1x128xf32>
    %321 = vector.extract_strided_slice %320 {offsets = [0, 0], sizes = [1, 32], strides = [1, 1]} : vector<1x128xf32> to vector<1x32xf32>
    %322 = vector.extract_strided_slice %320 {offsets = [0, 32], sizes = [1, 32], strides = [1, 1]} : vector<1x128xf32> to vector<1x32xf32>
    %323 = vector.extract_strided_slice %320 {offsets = [0, 64], sizes = [1, 32], strides = [1, 1]} : vector<1x128xf32> to vector<1x32xf32>
    %324 = vector.extract_strided_slice %320 {offsets = [0, 96], sizes = [1, 32], strides = [1, 1]} : vector<1x128xf32> to vector<1x32xf32>
    %325 = arith.mulf %322, %312 : vector<1x32xf32>
    %326 = arith.mulf %321, %323 : vector<1x32xf32>
    %327 = arith.addf %325, %326 : vector<1x32xf32>
    %328 = math.tanh %327 : vector<1x32xf32>
    %329 = arith.mulf %324, %328 : vector<1x32xf32>
    %cst_194 = arith.constant dense<0.000000e+00> : vector<1x128xf32>
    %330 = tpu.matmul %329, %1, %cst_194 {dimension_numbers = #tpu.dot_dimension_numbers<[1], [0], [0], [1], [0, 0, 1, 1], [], []>} : vector<1x32xf32>, vector<32x128xf32>, vector<1x128xf32> -> vector<1x128xf32>
    %331 = arith.addf %57, %330 : vector<1x128xf32>
    %332 = arith.mulf %331, %234 : vector<1x128xf32>
    %333 = math.tanh %332 : vector<1x128xf32>
    %334 = arith.mulf %333, %234 : vector<1x128xf32>
    %335 = arith.addf %334, %237 : vector<1x128xf32>
    %336 = vector.extract_strided_slice %335 {offsets = [0, 0], sizes = [1, 32], strides = [1, 1]} : vector<1x128xf32> to vector<1x32xf32>
    %337 = vector.extract_strided_slice %335 {offsets = [0, 32], sizes = [1, 32], strides = [1, 1]} : vector<1x128xf32> to vector<1x32xf32>
    %338 = vector.extract_strided_slice %335 {offsets = [0, 64], sizes = [1, 32], strides = [1, 1]} : vector<1x128xf32> to vector<1x32xf32>
    %339 = vector.extract_strided_slice %335 {offsets = [0, 96], sizes = [1, 32], strides = [1, 1]} : vector<1x128xf32> to vector<1x32xf32>
    %340 = arith.mulf %337, %327 : vector<1x32xf32>
    %341 = arith.mulf %336, %338 : vector<1x32xf32>
    %342 = arith.addf %340, %341 : vector<1x32xf32>
    %343 = math.tanh %342 : vector<1x32xf32>
    %344 = arith.mulf %339, %343 : vector<1x32xf32>
    %cst_195 = arith.constant dense<0.000000e+00> : vector<1x128xf32>
    %345 = tpu.matmul %344, %1, %cst_195 {dimension_numbers = #tpu.dot_dimension_numbers<[1], [0], [0], [1], [0, 0, 1, 1], [], []>} : vector<1x32xf32>, vector<32x128xf32>, vector<1x128xf32> -> vector<1x128xf32>
    %346 = arith.addf %29, %345 : vector<1x128xf32>
    %347 = arith.mulf %346, %234 : vector<1x128xf32>
    %348 = math.tanh %347 : vector<1x128xf32>
    %349 = arith.mulf %348, %234 : vector<1x128xf32>
    %350 = arith.addf %349, %237 : vector<1x128xf32>
    %351 = vector.extract_strided_slice %350 {offsets = [0, 0], sizes = [1, 32], strides = [1, 1]} : vector<1x128xf32> to vector<1x32xf32>
    %352 = vector.extract_strided_slice %350 {offsets = [0, 32], sizes = [1, 32], strides = [1, 1]} : vector<1x128xf32> to vector<1x32xf32>
    %353 = vector.extract_strided_slice %350 {offsets = [0, 64], sizes = [1, 32], strides = [1, 1]} : vector<1x128xf32> to vector<1x32xf32>
    %354 = vector.extract_strided_slice %350 {offsets = [0, 96], sizes = [1, 32], strides = [1, 1]} : vector<1x128xf32> to vector<1x32xf32>
    %355 = arith.mulf %352, %342 : vector<1x32xf32>
    %356 = arith.mulf %351, %353 : vector<1x32xf32>
    %357 = arith.addf %355, %356 : vector<1x32xf32>
    %358 = math.tanh %357 : vector<1x32xf32>
    %359 = arith.mulf %354, %358 : vector<1x32xf32>
    %360 = tpu.concatenate %359, %344, %329, %314, %299, %284, %269, %254 in 0 : vector<1x32xf32>, vector<1x32xf32>, vector<1x32xf32>, vector<1x32xf32>, vector<1x32xf32>, vector<1x32xf32>, vector<1x32xf32>, vector<1x32xf32> -> vector<8x32xf32>
    %c0_196 = arith.constant 0 : index
    %c0_197 = arith.constant 0 : index
    %361 = vector.load %arg5[%c0_196, %c0_197] : memref<32x128xf32, #tpu.memory_space<vmem>>, vector<32x128xf32>
    %cst_198 = arith.constant dense<0.000000e+00> : vector<8x128xf32>
    %362 = tpu.matmul %360, %361, %cst_198 {dimension_numbers = #tpu.dot_dimension_numbers<[1], [0], [0], [1], [0, 0, 1, 1], [], []>} : vector<8x32xf32>, vector<32x128xf32>, vector<8x128xf32> -> vector<8x128xf32>
    %c0_199 = arith.constant 0 : index
    %c0_200 = arith.constant 0 : index
    %363 = vector.load %arg6[%c0_199, %c0_200] : memref<1x128xf32, #tpu.memory_space<vmem>>, vector<1x128xf32>
    %364 = vector.broadcast %363 : vector<1x128xf32> to vector<8x128xf32>
    %365 = arith.addf %362, %364 : vector<8x128xf32>
    %cst_201 = arith.constant 0.000000e+00 : f32
    %366 = vector.broadcast %cst_201 : f32 to vector<8x128xf32>
    %367 = arith.maximumf %365, %366 : vector<8x128xf32>
    %c0_202 = arith.constant 0 : index
    %c0_203 = arith.constant 0 : index
    %368 = vector.load %arg7[%c0_202, %c0_203] : memref<128x128xf32, #tpu.memory_space<vmem>>, vector<128x128xf32>
    %cst_204 = arith.constant dense<0.000000e+00> : vector<8x128xf32>
    %369 = tpu.matmul %367, %368, %cst_204 {dimension_numbers = #tpu.dot_dimension_numbers<[1], [0], [0], [1], [0, 0, 1, 1], [], []>} : vector<8x128xf32>, vector<128x128xf32>, vector<8x128xf32> -> vector<8x128xf32>
    %c0_205 = arith.constant 0 : index
    %c0_206 = arith.constant 0 : index
    %370 = vector.load %arg8[%c0_205, %c0_206] : memref<1x128xf32, #tpu.memory_space<vmem>>, vector<1x128xf32>
    %371 = vector.broadcast %370 : vector<1x128xf32> to vector<8x128xf32>
    %372 = arith.addf %369, %371 : vector<8x128xf32>
    %cst_207 = arith.constant dense<0xFF800000> : vector<8xf32>
    %373 = vector.multi_reduction <maximumf>, %372, %cst_207 [1] : vector<8x128xf32> to vector<8xf32>
    %374 = vector.shape_cast %373 : vector<8xf32> to vector<8x1xf32>
    %375 = vector.broadcast %374 : vector<8x1xf32> to vector<8x128xf32>
    %376 = arith.subf %372, %375 : vector<8x128xf32>
    %377 = math.exp %376 : vector<8x128xf32>
    %cst_208 = arith.constant dense<0.000000e+00> : vector<8xf32>
    %378 = vector.multi_reduction <add>, %377, %cst_208 [1] : vector<8x128xf32> to vector<8xf32>
    %379 = vector.shape_cast %378 : vector<8xf32> to vector<8x1xf32>
    %380 = math.log %379 : vector<8x1xf32>
    %381 = vector.broadcast %380 : vector<8x1xf32> to vector<8x128xf32>
    %382 = arith.subf %376, %381 : vector<8x128xf32>
    %c0_209 = arith.constant 0 : index
    %c0_210 = arith.constant 0 : index
    %383 = vector.load %arg9[%c0_209, %c0_210] : memref<8x128xf32, #tpu.memory_space<vmem>>, vector<8x128xf32>
    tpu.vector_store %arg9[%c0_209, %c0_210], %382 {strides = array<i32>} : memref<8x128xf32, #tpu.memory_space<vmem>>, vector<8x128xf32>,
    return
  }
  func.func @transform_0(%arg0: i32, %arg1: memref<8x4xi32, #tpu.memory_space<smem>>) -> (i32, i32) {
    %c0_i32 = arith.constant 0 : i32
    %c0_i32_0 = arith.constant 0 : i32
    %c0_i32_1 = arith.constant 0 : i32
    return %c0_i32, %c0_i32_0 : i32, i32
  }
  func.func @transform_1(%arg0: i32, %arg1: memref<8x4xi32, #tpu.memory_space<smem>>) -> (i32, i32) {
    %c0_i32 = arith.constant 0 : i32
    %c0_i32_0 = arith.constant 0 : i32
    %c0_i32_1 = arith.constant 0 : i32
    return %c0_i32, %c0_i32_0 : i32, i32
  }
  func.func @transform_2(%arg0: i32, %arg1: memref<8x4xi32, #tpu.memory_space<smem>>) -> (i32, i32) {
    %c0_i32 = arith.constant 0 : i32
    %c0_i32_0 = arith.constant 0 : i32
    %c0_i32_1 = arith.constant 0 : i32
    return %c0_i32, %c0_i32_0 : i32, i32
  }
  func.func @transform_3(%arg0: i32, %arg1: memref<8x4xi32, #tpu.memory_space<smem>>) -> (i32, i32) {
    %c0_i32 = arith.constant 0 : i32
    %c0_i32_0 = arith.constant 0 : i32
    %c0_i32_1 = arith.constant 0 : i32
    return %c0_i32, %c0_i32_0 : i32, i32
  }
  func.func @transform_4(%arg0: i32, %arg1: memref<8x4xi32, #tpu.memory_space<smem>>) -> (i32, i32) {
    %c0_i32 = arith.constant 0 : i32
    %c0_i32_0 = arith.constant 0 : i32
    %c0_i32_1 = arith.constant 0 : i32
    return %c0_i32, %c0_i32_0 : i32, i32
  }
  func.func @transform_5(%arg0: i32, %arg1: memref<8x4xi32, #tpu.memory_space<smem>>) -> (i32, i32) {
    %c0_i32 = arith.constant 0 : i32
    %c0_i32_0 = arith.constant 0 : i32
    %c0_i32_1 = arith.constant 0 : i32
    return %c0_i32, %c0_i32_0 : i32, i32
  }
  func.func @transform_6(%arg0: i32, %arg1: memref<8x4xi32, #tpu.memory_space<smem>>) -> (i32, i32) {
    %c0_i32 = arith.constant 0 : i32
    %c0_i32_0 = arith.constant 0 : i32
    %c0_i32_1 = arith.constant 0 : i32
    return %c0_i32, %c0_i32_0 : i32, i32
  }
  func.func @transform_7(%arg0: i32, %arg1: memref<8x4xi32, #tpu.memory_space<smem>>) -> (i32, i32) {
    %c0_i32 = arith.constant 0 : i32
    %c0_i32_0 = arith.constant 0 : i32
    %c0_i32_1 = arith.constant 0 : i32
    return %c0_i32, %c0_i32_0 : i32, i32
  }
}

</mosaic_0001>

<bundles_post_ra>
// kernel: tpu_custom_call.1
= control target key start
LH: loop header
LB: loop body
LE: loop exit
PB: predicated region body
PF: predicated region fallthrough
CT: control target
= control target key end

     0   :  { %s2470_s0 = inlined_call_operand.vmem [shape: s32[8,4], index: 0, kind: input, shape index: {}]   ;;  %s2471_s1 = inlined_call_operand.hbm [shape: f32[16,128], index: 1, kind: input, shape index: {}]   ;;  %s2472_s2 = inlined_call_operand.hbm [shape: f32[32,128], index: 2, kind: input, shape index: {}]   ;;  %s2473_s3 = inlined_call_operand.vmem [shape: f32[1,128], index: 3, kind: input, shape index: {}]   ;;  %s2474_s4 = inlined_call_operand.hbm [shape: f32[32,128], index: 4, kind: input, shape index: {}]   ;;  %s2475_s5 = inlined_call_operand.vmem [shape: f32[1,128], index: 5, kind: input, shape index: {}]   ;;  %s2476_s6 = inlined_call_operand.hbm [shape: f32[128,128], index: 6, kind: input, shape index: {}]   ;;  %s2477_s7 = inlined_call_operand.vmem [shape: f32[1,128], index: 7, kind: input, shape index: {}]   ;;  %s2478_s8 = inlined_call_operand.hbm [shape: f32[8,128], index: 8, kind: output, shape index: {}]  }
   0x1   :  { %s13_s29 = sshll.u32 %s2470_s0, 4  ;;  %s14_s29 = int_to_ptr.vmem [resolvable:$true] %s13_s29 }
   0x2   :  { %s2003_s30 = scalar_lea.vmem %s14_s29, 128  ;;  %p2008_p1 = scmp.lt.s32.totalorder %s14_s29, %s14_s29 }
   0x3   :  { %p2004_p0 = scmp.ne.s32.totalorder %s14_s29, %s2003_s30  ;;  %p2009_p2 = scmp.lt.s32.totalorder %s2003_s30, %s2003_s30 }
   0x5   :  { %p2010_p3 = por %p2009_p2, %p2008_p1 }
   0x7   :  { %p2011_p4 = pnand %p2010_p3, %p2004_p0 }
   0x9   :  { %2014 = shalt.err (!%p2011_p4)  }
   0xa   :  { %s2125_s9 = smov [#allocation3]  }
   0xb   :  { %16 = dma.vmem_to_smem %s14_s29, 128, %s2125_s9, [#allocation2] }
   0xc   :  { %2115 = dma.done.wait [#allocation2], 128 }
   0xd   :  { %2116 = vsyncadd [#allocation2], 4294967168 }
   0xe   :  { %18 = sfence }
   0xf   :  { %19 = vsyncpa [#allocation5], 0 }
  0x10   :  { %20 = vsyncpa [#allocation8], 0 }
  0x11   :  { %21 = vsyncpa [#allocation11], 0 }
  0x12   :  { %22 = vsyncpa [#allocation6], 0  ;;  %s2126_s10 = smov [#allocation7]   ;;  %s2127_s0 = smov [#allocation4]  }
  0x13   :  { %s40_s11 = sshll.u32 %s2126_s10, 4  ;;  %s28_s12 = sshll.u32 %s2127_s0, 4  ;;  %s41_s11 = int_to_ptr.vmem [resolvable:$true] %s40_s11  ;;  %s29_s12 = int_to_ptr.vmem [resolvable:$true] %s28_s12 }
  0x14   :  { %s2023_s13 = scalar_lea.vmem %s41_s11, 512  ;;  %p2028_p6 = scmp.lt.s32.totalorder %s41_s11, %s41_s11 }
  0x15   :  { %p2024_p5 = scmp.ne.s32.totalorder %s41_s11, %s2023_s13  ;;  %p2029_p7 = scmp.lt.s32.totalorder %s2023_s13, %s2023_s13 }
  0x17   :  { %p2030_p8 = por %p2029_p7, %p2028_p6 }
  0x19   :  { %p2031_p9 = pnand %p2030_p8, %p2024_p5 }
  0x1b   :  { %2034 = shalt.err (!%p2031_p9)
}
  0x1c   :  { %s2128_s14 = smov 128   ;;  %s2129_s15 = smov 8  }
  0x1d   :  { %46 = dma.hbm_to_vmem [thread:$0]  %s2472_s2, 512, %s41_s11, [#allocation8], %s2128_s14, %s2128_s14, %s2129_s15  }
  0x1e   :  { %s2043_s18 = scalar_lea.vmem %s29_s12, 256  ;;  %p2048_p11 = scmp.lt.s32.totalorder %s29_s12, %s29_s12 }
  0x1f   :  { %p2044_p10 = scmp.ne.s32.totalorder %s29_s12, %s2043_s18  ;;  %p2049_p12 = scmp.lt.s32.totalorder %s2043_s18, %s2043_s18 }
  0x21   :  { %p2050_p13 = por %p2049_p12, %p2048_p11 }
  0x23   :  { %p2051_p0 = pnand %p2050_p13, %p2044_p10 }
  0x25   :  { %2054 = shalt.err (!%p2051_p0)
}
  0x26   :  { %34 = dma.hbm_to_vmem [thread:$0]  %s2471_s1, 256, %s29_s12, [#allocation5], %s2128_s14, %s2128_s14, %s2129_s15  }
  0x27   :  { %s2130_s21 = smov [#allocation9]   ;;  %s2131_s23 = smov [#allocation10]  }
  0x28   :  { %s54_s22 = sshll.u32 %s2130_s21, 4  ;;  %s68_s24 = sshll.u32 %s2131_s23, 4  ;;  %s55_s22 = int_to_ptr.vmem [resolvable:$true] %s54_s22  ;;  %s69_s24 = int_to_ptr.vmem [resolvable:$true] %s68_s24 }
  0x29   :  { %s2063_s2 = scalar_lea.vmem %s55_s22, 512  ;;  %p2068_p2 = scmp.lt.s32.totalorder %s55_s22, %s55_s22 }
  0x2a   :  { %p2064_p1 = scmp.ne.s32.totalorder %s55_s22, %s2063_s2  ;;  %p2069_p3 = scmp.lt.s32.totalorder %s2063_s2, %s2063_s2 }
  0x2c   :  { %p2070_p4 = por %p2069_p3, %p2068_p2 }
  0x2e   :  { %p2071_p5 = pnand %p2070_p4, %p2064_p1 }
  0x30   :  { %2074 = shalt.err (!%p2071_p5)
}
  0x31   :  { %60 = dma.hbm_to_vmem [thread:$0]  %s2474_s4, 512, %s55_s22, [#allocation8], %s2128_s14, %s2128_s14, %s2129_s15  }
  0x32   :  { %s2083_s1 = scalar_lea.vmem %s69_s24, 2048  ;;  %p2088_p7 = scmp.lt.s32.totalorder %s69_s24, %s69_s24 }
  0x33   :  { %p2084_p6 = scmp.ne.s32.totalorder %s69_s24, %s2083_s1  ;;  %p2089_p8 = scmp.lt.s32.totalorder %s2083_s1, %s2083_s1 }
  0x35   :  { %p2090_p9 = por %p2089_p8, %p2088_p7 }
  0x37   :  { %p2091_p10 = pnand %p2090_p9, %p2084_p6 }
  0x39   :  { %2094 = shalt.err (!%p2091_p10)
}
  0x3a   :  { %74 = dma.hbm_to_vmem [thread:$0]  %s2476_s6, 2048, %s69_s24, [#allocation11], %s2128_s14, %s2128_s14, %s2129_s15  }
  0x3b   :  { %2117 = dma.done.wait [#allocation5], 256  }
  0x3c   :  { %2118 = vsyncadd [#allocation5], 4294967040 }
  0x3d   :  { %2119 = dma.done.wait [#allocation8], 1024  }
  0x3e   :  { %2120 = vsyncadd [#allocation8], 4294966272 }
  0x3f   :  { %2121 = dma.done.wait [#allocation11], 2048  }
  0x40   :  { %2122 = vsyncadd [#allocation11], 4294965248  ;;  %v2132_v0 = vmov 0.0   ;;  %vm2133_vm0 = vmmov 0   ;;  %v2216_v1 = vld [vmem:[#allocation7 + $0x18] sm:$0xff]  ;;  %v2218_v2 = vld [vmem:[#allocation7 + $0x10] sm:$0xff]  ;;  %v374_v9 = vlaneseq }
  0x41   :  { %1820 = vmatprep.subr.mxu0 %v2132_v0  ;;  %1828 = vmatprep.mubr.msk.f32.mxu0 %vm2133_vm0, %v2132_v0  ;;  %v2223_v3 = vld [vmem:[#allocation7 + $0x8] sm:$0xff]  ;;  %v2229_v4 = vld [vmem:[#allocation7] sm:$0xff]  ;;  %s1657_s4 = sld [smem:[#allocation3 + $0x380]]  ;;  %v2254_v5 = vld [vmem:[%s2473_s3] sm:$0x1]  ;;  %v2134_v16 = vmov 0.5  }
  0x42   :  { %1853 = vmatprep.subr.mxu1 %v2132_v0  ;;  %1861 = vmatprep.mubr.msk.f32.mxu1 %vm2133_vm0, %v2132_v0  ;;  %s1663_s6 = sld [smem:[#allocation3 + $0x381]]  ;;  %v375_v12 = vand.u32 127, %v374_v9  ;;  %s2135_s3 = smov 64   ;;  %v479_v32 = vshrl.u32 %v374_v9, 7  ;;  %vm381_vm4 = vcmask 261120   ;;  %vm1191_vm5 = vcmask 1040384  }
  0x43   :  { %1821 = vmatpush3.msra.mxu0 %v2216_v1  ;;  %1854 = vmatpush3.msra.mxu1 %v2216_v1  ;;  %s1670_s29 = sld [smem:[#allocation3 + $0x382]]  ;;  %s2136_s14 = smov 32   ;;  %vm1193_vm6 = vcmask 1041408   ;;  %vm1195_vm7 = vcmask 1042432   ;;  %vm1197_vm8 = vcmask 1043456   ;;  %vm1199_vm9 = vcmask 1044480  }
  0x44   :  { %1822 = vmatprep.subr.mxu0 %v2132_v0  ;;  %1855 = vmatprep.subr.mxu1 %v2132_v0  ;;  %s1677_s30 = sld [smem:[#allocation3 + $0x383]]  ;;  %vm376_vm1 = vcmp.ge.s32.totalorder %v375_v12, 64  ;;  %vm377_vm2 = vcmp.lt.s32.totalorder %v375_v12, 96  ;;  %v2270_v33 = vsub.s32 0, %v479_v32  ;;  %vm1201_vm10 = vcmask 1045504  }
  0x45   :  { %1823 = vmatpush3.msra.mxu0 %v2218_v2  ;;  %1856 = vmatpush3.msra.mxu1 %v2218_v2  ;;  %vm378_vm3 = vmand %vm376_vm1, %vm377_vm2  ;;  %s1630_s15 = sld [smem:[#allocation3 + $0x300]]  ;;  %vm1203_vm11 = vcmask 1046528  }
  0x46   :  { %1824 = vmatprep.subr.mxu0 %v2132_v0  ;;  %1857 = vmatprep.subr.mxu1 %v2132_v0  ;;  %v2257_v17 = vsel %vm378_vm3, 1.0, %v2134_v16  ;;  %v2260_v23 = vsel %vm378_vm3, 0.0, %v2134_v16  ;;  %s1636_s16 = sld [smem:[#allocation3 + $0x301]] }
  0x47   :  { %1825 = vmatpush3.msra.mxu0 %v2223_v3  ;;  %1858 = vmatpush3.msra.mxu1 %v2223_v3  ;;  %p340_p11 = scmp.gt.s32.totalorder %s1657_s4, 0  ;;  %p1658_p13 = scmp.lt.s32.totalorder %s1657_s4, 3 }
  0x48   :  { %1826 = vmatprep.subr.mxu0 %v2132_v0  ;;  %1859 = vmatprep.subr.mxu1 %v2132_v0  ;;  %p348_p12 = scmp.gt.s32.totalorder %s1663_s6, 0  ;;  %p1664_p0 = scmp.lt.s32.totalorder %s1663_s6, 3 }
  0x49   :  { %1827 = vmatpush3.msra.mxu0 %v2229_v4  ;;  %1860 = vmatpush3.msra.mxu1 %v2229_v4  ;;  %s2480_s4 = smov (!%p340_p11, %s1657_s4), 0  ;;  %p357_p1 = scmp.gt.s32.totalorder %s1670_s29, 0 }
  0x4a   :  { %1829 = vmatmul.mubr.f32.vlgmr.msra.gmra.mxu0 %v2132_v0  ;;  %1831 = vmatprep.subr.mxu0 %v2132_v0  ;;  %s2482_s6 = smov (!%p348_p12, %s1663_s6), 0  ;;  %s2484_s4 = smov (!%p1658_p13, %s2480_s4), 3 }
  0x4b   :  { %1832 = vmatpush3.msra.mxu0 %v2216_v1  ;;  %1839 = vmatprep.mubr.msk.f32.mxu0 %vm2133_vm0, %v2132_v0  ;;  %s2486_s6 = smov (!%p1664_p0, %s2482_s6), 3  ;;  %p1671_p2 = scmp.lt.s32.totalorder %s1670_s29, 3 }
  0x4c   :  { %1833 = vmatprep.subr.mxu0 %v2132_v0  ;;  %1875 = vmatprep.subr.mxu1 %v2132_v0  ;;  %s2488_s29 = smov (!%p357_p1, %s1670_s29), 0  ;;  %p366_p3 = scmp.gt.s32.totalorder %s1677_s30, 0 }
  0x4d   :  { %1834 = vmatpush3.msra.mxu0 %v2218_v2  ;;  %p1678_p4 = scmp.lt.s32.totalorder %s1677_s30, 3  ;;  %s344_s11 = scalar_lea.vmem [#allocation4], %s2484_s4 }
  0x4e   :  { %1835 = vmatprep.subr.mxu0 %v2132_v0  ;;  %v345_v6 = vld [vmem:[%s344_s11] sm:$0x1]  ;;  %s2490_s29 = smov (!%p1671_p2, %s2488_s29), 3  ;;  %s2492_s30 = smov (!%p366_p3, %s1677_s30), 0 }
  0x4f   :  { %1836 = vmatpush3.msra.mxu0 %v2223_v3  ;;  %v346_v7 = vadd.f32 %v345_v6, %v2254_v5  ;;  %s1463_s0 = scalar_lea.vmem [#allocation4], %s2486_s6  ;;  %s2494_s30 = smov (!%p1678_p4, %s2492_s30), 3 }
  0x50   :  { %1837 = vmatprep.subr.mxu0 %v2132_v0  ;;  %v1669_v8 = vld [vmem:[%s1463_s0 + $0x4] sm:$0x1]  ;;  %s1465_s12 = scalar_lea.vmem [#allocation4], %s2490_s29  ;;  %s1467_s13 = scalar_lea.vmem [#allocation4], %s2494_s30 }
  0x51   :  { %1838 = vmatpush3.msra.mxu0 %v2229_v4  ;;  %v355_v10 = vadd.f32 %v1669_v8, %v346_v7  ;;  %v1676_v11 = vld [vmem:[%s1465_s12 + $0x8] sm:$0x1]  ;;  %v1683_v14 = vld [vmem:[%s1467_s13 + $0xc] sm:$0x1]  ;;  %s1643_s17 = sld [smem:[#allocation3 + $0x302]]  ;;  %p305_p5 = scmp.gt.s32.totalorder %s1630_s15, 0 }
  0x52   :  { %1842 = vmatprep.subr.mxu0 %v2132_v0  ;;  %p313_p6 = scmp.gt.s32.totalorder %s1636_s16, 0  ;;  %s1650_s18 = sld [smem:[#allocation3 + $0x303]] }
  0x53   :  { %v364_v13 = vadd.f32 %v1676_v11, %v355_v10  ;;  %p1631_p7 = scmp.lt.s32.totalorder %s1630_s15, 3  ;;  %p1637_p8 = scmp.lt.s32.totalorder %s1636_s16, 3 }
  0x54   :  { %s2496_s15 = smov (!%p305_p5, %s1630_s15), 0  ;;  %s2498_s16 = smov (!%p313_p6, %s1636_s16), 0 }
  0x55   :  { %v373_v15 = vadd.f32 %v1683_v14, %v364_v13  ;;  %s2500_s15 = smov (!%p1631_p7, %s2496_s15), 3  ;;  %s2502_s16 = smov (!%p1637_p8, %s2498_s16), 3 }
  0x56   :  { %s309_s19 = scalar_lea.vmem [#allocation4], %s2500_s15  ;;  %s1456_s20 = scalar_lea.vmem [#allocation4], %s2502_s16 }
  0x57   :  { %p322_p9 = scmp.gt.s32.totalorder %s1643_s17, 0  ;;  %p1644_p10 = scmp.lt.s32.totalorder %s1643_s17, 3  ;;  %v310_v38 = vld [vmem:[%s309_s19] sm:$0x1]  ;;  %v1642_v40 = vld [vmem:[%s1456_s20 + $0x4] sm:$0x1] }
  0x58   :  { %p331_p11 = scmp.gt.s32.totalorder %s1650_s18, 0  ;;  %p1651_p12 = scmp.lt.s32.totalorder %s1650_s18, 3  ;;  %v311_v39 = vadd.f32 %v310_v38, %v2254_v5 }
  0x59   :  { %s2504_s17 = smov (!%p322_p9, %s1643_s17), 0  ;;  %s1603_s23 = sld [smem:[#allocation3 + $0x280]] }
  0x5a   :  { %s2506_s17 = smov (!%p1644_p10, %s2504_s17), 3  ;;  %s2508_s18 = smov (!%p331_p11, %s1650_s18), 0  ;;  %v320_v41 = vadd.f32 %v1642_v40, %v311_v39 }
  0x5b   :  { %s2510_s18 = smov (!%p1651_p12, %s2508_s18), 3  ;;  %s1458_s21 = scalar_lea.vmem [#allocation4], %s2506_s17 }
  0x5c   :  { %v1649_v42 = vld [vmem:[%s1458_s21 + $0x8] sm:$0x1]  ;;  %s1460_s22 = scalar_lea.vmem [#allocation4], %s2510_s18  ;;  %s1609_s24 = sld [smem:[#allocation3 + $0x281]] }
  0x5d   :  { %v329_v43 = vadd.f32 %v1649_v42, %v320_v41  ;;  %v1656_v44 = vld [vmem:[%s1460_s22 + $0xc] sm:$0x1]  ;;  %s1616_s2 = sld [smem:[#allocation3 + $0x282]] }
  0x5e   :  { %s1623_s25 = sld [smem:[#allocation3 + $0x283]] }
  0x5f   :  { %v338_v45 = vadd.f32 %v1656_v44, %v329_v43  ;;  %p270_p13 = scmp.gt.s32.totalorder %s1603_s23, 0  ;;  %p1604_p1 = scmp.lt.s32.totalorder %s1603_s23, 3 }
  0x60   :  { %s1576_s4 = sld [smem:[#allocation3 + $0x200]] }
  0x61   :  { %s2512_s23 = smov (!%p270_p13, %s1603_s23), 0  ;;  %s1582_s6 = sld [smem:[#allocation3 + $0x201]] }
  0x62   :  { %p278_p0 = scmp.gt.s32.totalorder %s1609_s24, 0  ;;  %p1610_p2 = scmp.lt.s32.totalorder %s1609_s24, 3 }
  0x63   :  { %p287_p3 = scmp.gt.s32.totalorder %s1616_s2, 0  ;;  %s2516_s23 = smov (!%p1604_p1, %s2512_s23), 3 }
  0x64   :  { %s2514_s24 = smov (!%p278_p0, %s1609_s24), 0  ;;  %p1617_p4 = scmp.lt.s32.totalorder %s1616_s2, 3 }
  0x65   :  { %s2518_s24 = smov (!%p1610_p2, %s2514_s24), 3  ;;  %s2520_s2 = smov (!%p287_p3, %s1616_s2), 0 }
  0x66   :  { %p296_p5 = scmp.gt.s32.totalorder %s1623_s25, 0  ;;  %p1624_p6 = scmp.lt.s32.totalorder %s1623_s25, 3 }
  0x67   :  { %s274_s26 = scalar_lea.vmem [#allocation4], %s2516_s23  ;;  %s2522_s2 = smov (!%p1617_p4, %s2520_s2), 3 }
  0x68   :  { %v275_v63 = vld [vmem:[%s274_s26] sm:$0x1]  ;;  %s2524_s25 = smov (!%p296_p5, %s1623_s25), 0  ;;  %s1449_s1 = scalar_lea.vmem [#allocation4], %s2518_s24 }
  0x69   :  { %v276_v6 = vadd.f32 %v275_v63, %v2254_v5  ;;  %v1615_v7 = vld [vmem:[%s1449_s1 + $0x4] sm:$0x1]  ;;  %s2526_s25 = smov (!%p1624_p6, %s2524_s25), 3  ;;  %s1451_s27 = scalar_lea.vmem [#allocation4], %s2522_s2 }
  0x6a   :  { %v1622_v9 = vld [vmem:[%s1451_s27 + $0x8] sm:$0x1]  ;;  %s1453_s28 = scalar_lea.vmem [#allocation4], %s2526_s25  ;;  %s1589_s29 = sld [smem:[#allocation3 + $0x202]] }
  0x6b   :  { %v285_v8 = vadd.f32 %v1615_v7, %v276_v6  ;;  %v1629_v11 = vld [vmem:[%s1453_s28 + $0xc] sm:$0x1]  ;;  %p235_p7 = scmp.gt.s32.totalorder %s1576_s4, 0  ;;  %p243_p8 = scmp.gt.s32.totalorder %s1582_s6, 0 }
  0x6c   :  { %s1596_s30 = sld [smem:[#allocation3 + $0x203]]  ;;  %p1577_p9 = scmp.lt.s32.totalorder %s1576_s4, 3 }
  0x6d   :  { %v294_v10 = vadd.f32 %v1622_v9, %v285_v8  ;;  %p1583_p10 = scmp.lt.s32.totalorder %s1582_s6, 3  ;;  %s2528_s4 = smov (!%p235_p7, %s1576_s4), 0 }
  0x6e   :  { %s2530_s6 = smov (!%p243_p8, %s1582_s6), 0  ;;  %s2532_s4 = smov (!%p1577_p9, %s2528_s4), 3 }
  0x6f   :  { %v303_v12 = vadd.f32 %v1629_v11, %v294_v10  ;;  %s2534_s6 = smov (!%p1583_p10, %s2530_s6), 3  ;;  %s239_s9 = scalar_lea.vmem [#allocation4], %s2532_s4 }
  0x70   :  { %p252_p11 = scmp.gt.s32.totalorder %s1589_s29, 0  ;;  %p1590_p12 = scmp.lt.s32.totalorder %s1589_s29, 3  ;;  %v240_v32 = vld [vmem:[%s239_s9] sm:$0x1] }
  0x71   :  { %s1442_s10 = scalar_lea.vmem [#allocation4], %s2534_s6  ;;  %s1549_s12 = sld [smem:[#allocation3 + $0x180]] }
  0x72   :  { %s2536_s29 = smov (!%p252_p11, %s1589_s29), 0  ;;  %p261_p13 = scmp.gt.s32.totalorder %s1596_s30, 0 }
  0x73   :  { %p1597_p0 = scmp.lt.s32.totalorder %s1596_s30, 3  ;;  %s2538_s29 = smov (!%p1590_p12, %s2536_s29), 3 }
  0x74   :  { %s2540_s30 = smov (!%p261_p13, %s1596_s30), 0  ;;  %s1444_s11 = scalar_lea.vmem [#allocation4], %s2538_s29 }
  0x75   :  { %s2542_s30 = smov (!%p1597_p0, %s2540_s30), 3  ;;  %v1595_v38 = vld [vmem:[%s1444_s11 + $0x8] sm:$0x1]  ;;  %s1555_s13 = sld [smem:[#allocation3 + $0x181]] }
  0x76   :  { %s1446_s0 = scalar_lea.vmem [#allocation4], %s2542_s30  ;;  %s1562_s15 = sld [smem:[#allocation3 + $0x182]] }
  0x77   :  { %v1602_v40 = vld [vmem:[%s1446_s0 + $0xc] sm:$0x1]  ;;  %p200_p1 = scmp.gt.s32.totalorder %s1549_s12, 0  ;;  %s1569_s16 = sld [smem:[#allocation3 + $0x183]] }
  0x78   :  { %p1550_p3 = scmp.lt.s32.totalorder %s1549_s12, 3  ;;  %s1522_s21 = sld [smem:[#allocation3 + $0x100]] }
  0x79   :  { %s2544_s12 = smov (!%p200_p1, %s1549_s12), 0  ;;  %s1528_s22 = sld [smem:[#allocation3 + $0x101]] }
  0x7a   :  { %s2548_s12 = smov (!%p1550_p3, %s2544_s12), 3  ;;  %s1535_s23 = sld [smem:[#allocation3 + $0x102]] }
  0x7b   :  { %p208_p2 = scmp.gt.s32.totalorder %s1555_s13, 0  ;;  %p1556_p4 = scmp.lt.s32.totalorder %s1555_s13, 3 }
  0x7c   :  { %p217_p5 = scmp.gt.s32.totalorder %s1562_s15, 0  ;;  %p1563_p6 = scmp.lt.s32.totalorder %s1562_s15, 3 }
  0x7d   :  { %s2546_s13 = smov (!%p208_p2, %s1555_s13), 0  ;;  %p226_p7 = scmp.gt.s32.totalorder %s1569_s16, 0 }
  0x7e   :  { %s2550_s13 = smov (!%p1556_p4, %s2546_s13), 3  ;;  %s2552_s15 = smov (!%p217_p5, %s1562_s15), 0 }
  0x7f   :  { %p1570_p8 = scmp.lt.s32.totalorder %s1569_s16, 3  ;;  %s204_s17 = scalar_lea.vmem [#allocation4], %s2548_s12 }
  0x80   :  { %s2554_s15 = smov (!%p1563_p6, %s2552_s15), 3  ;;  %s2556_s16 = smov (!%p226_p7, %s1569_s16), 0 }
  0x81   :  { %s1435_s18 = scalar_lea.vmem [#allocation4], %s2550_s13  ;;  %s2558_s16 = smov (!%p1570_p8, %s2556_s16), 3 }
  0x82   :  { %s1437_s19 = scalar_lea.vmem [#allocation4], %s2554_s15  ;;  %s1439_s20 = scalar_lea.vmem [#allocation4], %s2558_s16 }
  0x83   :  { %v1568_v6 = vld [vmem:[%s1437_s19 + $0x8] sm:$0x1]  ;;  %v1575_v8 = vld [vmem:[%s1439_s20 + $0xc] sm:$0x1]  ;;  %p165_p9 = scmp.gt.s32.totalorder %s1522_s21, 0  ;;  %p173_p10 = scmp.gt.s32.totalorder %s1528_s22, 0 }
  0x84   :  { %s1542_s24 = sld [smem:[#allocation3 + $0x103]]  ;;  %p1523_p11 = scmp.lt.s32.totalorder %s1522_s21, 3 }
  0x85   :  { %p1529_p12 = scmp.lt.s32.totalorder %s1528_s22, 3  ;;  %s2560_s21 = smov (!%p165_p9, %s1522_s21), 0 }
  0x86   :  { %s2562_s22 = smov (!%p173_p10, %s1528_s22), 0  ;;  %p182_p13 = scmp.gt.s32.totalorder %s1535_s23, 0 }
  0x87   :  { %s2564_s21 = smov (!%p1523_p11, %s2560_s21), 3  ;;  %s2566_s22 = smov (!%p1529_p12, %s2562_s22), 3 }
  0x88   :  { %p1536_p0 = scmp.lt.s32.totalorder %s1535_s23, 3  ;;  %s2568_s23 = smov (!%p182_p13, %s1535_s23), 0 }
  0x89   :  { %s169_s2 = scalar_lea.vmem [#allocation4], %s2564_s21  ;;  %s1428_s25 = scalar_lea.vmem [#allocation4], %s2566_s22 }
  0x8a   :  { %p191_p1 = scmp.gt.s32.totalorder %s1542_s24, 0  ;;  %p1543_p2 = scmp.lt.s32.totalorder %s1542_s24, 3 }
  0x8b   :  { %s2570_s23 = smov (!%p1536_p0, %s2568_s23), 3  ;;  %s1495_s27 = sld [smem:[#allocation3 + $0x80]] }
  0x8c   :  { %s2572_s24 = smov (!%p191_p1, %s1542_s24), 0  ;;  %s1430_s26 = scalar_lea.vmem [#allocation4], %s2570_s23 }
  0x8d   :  { %s2574_s24 = smov (!%p1543_p2, %s2572_s24), 3  ;;  %s1501_s28 = sld [smem:[#allocation3 + $0x81]] }
  0x8e   :  { %s1432_s1 = scalar_lea.vmem [#allocation4], %s2574_s24  ;;  %s1508_s4 = sld [smem:[#allocation3 + $0x82]] }
  0x8f   :  { %s1515_s6 = sld [smem:[#allocation3 + $0x83]] }
  0x90   :  { %s94_s11 = sld [smem:[#allocation3]] }
  0x91   :  { %p130_p3 = scmp.gt.s32.totalorder %s1495_s27, 0  ;;  %p1496_p5 = scmp.lt.s32.totalorder %s1495_s27, 3 }
  0x92   :  { %s1474_s0 = sld [smem:[#allocation3 + $0x1]] }
  0x93   :  { %p138_p4 = scmp.gt.s32.totalorder %s1501_s28, 0  ;;  %p1502_p6 = scmp.lt.s32.totalorder %s1501_s28, 3 }
  0x94   :  { %s2576_s27 = smov (!%p130_p3, %s1495_s27), 0  ;;  %p147_p7 = scmp.gt.s32.totalorder %s1508_s4, 0 }
  0x95   :  { %s2578_s28 = smov (!%p138_p4, %s1501_s28), 0  ;;  %s2580_s27 = smov (!%p1496_p5, %s2576_s27), 3 }
  0x96   :  { %s2582_s28 = smov (!%p1502_p6, %s2578_s28), 3  ;;  %p1509_p8 = scmp.lt.s32.totalorder %s1508_s4, 3 }
  0x97   :  { %s2584_s4 = smov (!%p147_p7, %s1508_s4), 0  ;;  %p156_p9 = scmp.gt.s32.totalorder %s1515_s6, 0 }
  0x98   :  { %p1516_p10 = scmp.lt.s32.totalorder %s1515_s6, 3  ;;  %s134_s29 = scalar_lea.vmem [#allocation4], %s2580_s27 }
  0x99   :  { %s2586_s4 = smov (!%p1509_p8, %s2584_s4), 3  ;;  %s2588_s6 = smov (!%p156_p9, %s1515_s6), 0 }
  0x9a   :  { %s1421_s30 = scalar_lea.vmem [#allocation4], %s2582_s28  ;;  %s2590_s6 = smov (!%p1516_p10, %s2588_s6), 3 }
  0x9b   :  { %s1423_s9 = scalar_lea.vmem [#allocation4], %s2586_s4  ;;  %s1481_s12 = sld [smem:[#allocation3 + $0x2]] }
  0x9c   :  { %p95_p11 = scmp.gt.s32.totalorder %s94_s11, 0  ;;  %p103_p12 = scmp.gt.s32.totalorder %s1474_s0, 0 }
  0x9d   :  { %s1488_s13 = sld [smem:[#allocation3 + $0x3]]  ;;  %p1469_p13 = scmp.lt.s32.totalorder %s94_s11, 3 }
  0x9e   :  { %p1475_p0 = scmp.lt.s32.totalorder %s1474_s0, 3  ;;  %s2592_s11 = smov (!%p95_p11, %s94_s11), 0 }
  0x9f   :  { %s2594_s0 = smov (!%p103_p12, %s1474_s0), 0  ;;  %s2596_s11 = smov (!%p1469_p13, %s2592_s11), 3 }
  0xa0   :  { %s2598_s0 = smov (!%p1475_p0, %s2594_s0), 3  ;;  %s99_s15 = scalar_lea.vmem [#allocation4], %s2596_s11 }
  0xa1   :  { %p112_p1 = scmp.gt.s32.totalorder %s1481_s12, 0  ;;  %p1482_p2 = scmp.lt.s32.totalorder %s1481_s12, 3 }
  0xa2   :  { %s1414_s16 = scalar_lea.vmem [#allocation4], %s2598_s0 }
  0xa3   :  { %s2600_s12 = smov (!%p112_p1, %s1481_s12), 0  ;;  %p121_p3 = scmp.gt.s32.totalorder %s1488_s13, 0 }
  0xa4   :  { %p1489_p4 = scmp.lt.s32.totalorder %s1488_s13, 3  ;;  %s2602_s12 = smov (!%p1482_p2, %s2600_s12), 3 }
  0xa5   :  { %s2604_s13 = smov (!%p121_p3, %s1488_s13), 0 }
  0xa6   :  { %s2606_s13 = smov (!%p1489_p4, %s2604_s13), 3 }
 0x10a   :  { %v451_v18 = vpop.f32.mrf.mxu0 }
 0x10b   :  { %v455_v19 = vadd.f32 %v451_v18, %v373_v15 }
 0x10c   :  { %v1830_v20 = vpop.f32.mrf.mxu0 }
 0x10d   :  { %v456_v21 = vmul.f32 %v455_v19, %v2257_v17 }
 0x10f   :  { %1967 = vtanh.f32 %v456_v21 }
 0x11c   :  { %v1968_v22 = vpop.eup %1967 }
 0x11d   :  { %v458_v24 = vmul.f32 %v1968_v22, %v2257_v17 }
 0x11f   :  { %v459_v25 = vadd.f32 %v458_v24, %v2260_v23 }
 0x121   :  { %462 = vrot.lane.b32.xlu0 %v459_v25, %s2135_s3  ;;  %v460_v28 = vmul.f32 0.0, %v459_v25 }
 0x193   :  { %v463_v26 = vpop.permute.xlu0 %462 }
 0x194   :  { %v465_v27 = vmul.f32 %v463_v26, %v459_v25 }
 0x196   :  { %467 = vrot.lane.b32.xlu0 %v465_v27, %s2136_s14 }
 0x208   :  { %v468_v29 = vpop.permute.xlu0 %467 }
 0x209   :  { %v2266_v30 = vadd.f32 %v468_v29, %v460_v28 }
 0x20b   :  { %1969 = vtanh.f32 %v2266_v30 }
 0x218   :  { %v1970_v31 = vpop.eup %1969 }
 0x219   :  { %473 = vrot.lane.b32.xlu1 %v1970_v31, %s2135_s3 }
 0x28b   :  { %v474_v34 = vpop.permute.xlu1 %473 }
 0x28c   :  { %v476_v35 = vmul.f32 %v474_v34, %v459_v25  ;;  %v241_v34 = vadd.f32 %v240_v32, %v2254_v5  ;;  %v1548_v32 = vld [vmem:[%s1432_s1 + $0xc] sm:$0x1] }
 0x28e   :  { %v2273_v36 = vrot.slane %v476_v35, %v2270_v33  ;;  %v1588_v35 = vld [vmem:[%s1442_s10 + $0x4] sm:$0x1]  ;;  %s1425_s10 = scalar_lea.vmem [#allocation4], %s2590_s6 }
 0x290   :  { %482 = vrot.lane.b32.xlu1 %v2273_v36, %s2136_s14 }
 0x302   :  { %v483_v37 = vpop.permute.xlu1 %482 }
 0x303   :  { %1840 = vmatmul.mubr.msk.f32.vlgmr.msra.gmra.mxu0 %vm381_vm4, %v483_v37  ;;  %v250_v37 = vadd.f32 %v1588_v35, %v241_v34 }
 0x304   :  { %1843 = vmatpush3.msra.mxu0 %v2216_v1  ;;  %1850 = vmatprep.mubr.msk.f32.mxu0 %vm2133_vm0, %v2132_v0 }
 0x305   :  { %1844 = vmatprep.subr.mxu0 %v2132_v0  ;;  %v259_v39 = vadd.f32 %v1595_v38, %v250_v37 }
 0x306   :  { %1845 = vmatpush3.msra.mxu0 %v2218_v2 }
 0x307   :  { %1846 = vmatprep.subr.mxu0 %v2132_v0  ;;  %v268_v41 = vadd.f32 %v1602_v40, %v259_v39 }
 0x308   :  { %1847 = vmatpush3.msra.mxu0 %v2223_v3 }
 0x309   :  { %1848 = vmatprep.subr.mxu0 %v2132_v0 }
 0x30a   :  { %1849 = vmatpush3.msra.mxu0 %v2229_v4 }
 0x30b   :  { %1864 = vmatprep.subr.mxu0 %v2132_v0 }
 0x3c3   :  { %v552_v46 = vpop.f32.mrf.mxu0 }
 0x3c4   :  { %v556_v47 = vadd.f32 %v552_v46, %v338_v45 }
 0x3c5   :  { %v1841_v48 = vpop.f32.mrf.mxu0 }
 0x3c6   :  { %v557_v49 = vmul.f32 %v556_v47, %v2257_v17 }
 0x3c8   :  { %1971 = vtanh.f32 %v557_v49 }
 0x3d5   :  { %v1972_v50 = vpop.eup %1971 }
 0x3d6   :  { %v559_v51 = vmul.f32 %v1972_v50, %v2257_v17 }
 0x3d8   :  { %v560_v52 = vadd.f32 %v559_v51, %v2260_v23 }
 0x3da   :  { %563 = vrot.lane.b32.xlu0 %v560_v52, %s2135_s3  ;;  %v561_v55 = vmul.f32 %v560_v52, %v2266_v30 }
 0x44c   :  { %v564_v53 = vpop.permute.xlu0 %563 }
 0x44d   :  { %v566_v54 = vmul.f32 %v564_v53, %v560_v52 }
 0x44f   :  { %568 = vrot.lane.b32.xlu1 %v566_v54, %s2136_s14 }
 0x4c1   :  { %v569_v56 = vpop.permute.xlu1 %568 }
 0x4c2   :  { %v2295_v57 = vadd.f32 %v569_v56, %v561_v55 }
 0x4c4   :  { %1973 = vtanh.f32 %v2295_v57 }
 0x4d1   :  { %v1974_v58 = vpop.eup %1973 }
 0x4d2   :  { %574 = vrot.lane.b32.xlu0 %v1974_v58, %s2135_s3 }
 0x544   :  { %v575_v59 = vpop.permute.xlu0 %574 }
 0x545   :  { %v577_v60 = vmul.f32 %v575_v59, %v560_v52  ;;  %v205_v59 = vld [vmem:[%s204_s17] sm:$0x1]  ;;  %s1416_s17 = scalar_lea.vmem [#allocation4], %s2602_s12 }
 0x547   :  { %v2300_v61 = vrot.slane %v577_v60, %v2270_v33  ;;  %v206_v60 = vadd.f32 %v205_v59, %v2254_v5 }
 0x549   :  { %583 = vrot.lane.b32.xlu1 %v2300_v61, %s2136_s14 }
 0x5bb   :  { %v584_v62 = vpop.permute.xlu1 %583 }
 0x5bc   :  { %1851 = vmatmul.mubr.msk.f32.vlgmr.msra.gmra.mxu0 %vm381_vm4, %v584_v62  ;;  %v1561_v62 = vld [vmem:[%s1435_s18 + $0x4] sm:$0x1]  ;;  %s1418_s18 = scalar_lea.vmem [#allocation4], %s2606_s13 }
 0x5bd   :  { %1865 = vmatpush3.msra.mxu0 %v2216_v1  ;;  %1872 = vmatprep.mubr.msk.f32.mxu0 %vm2133_vm0, %v2132_v0  ;;  %v215_v63 = vadd.f32 %v1561_v62, %v206_v60  ;;  %v1521_v60 = vld [vmem:[%s1425_s10 + $0xc] sm:$0x1] }
 0x5be   :  { %1866 = vmatprep.subr.mxu0 %v2132_v0 }
 0x5bf   :  { %1867 = vmatpush3.msra.mxu0 %v2218_v2  ;;  %v224_v7 = vadd.f32 %v1568_v6, %v215_v63 }
 0x5c0   :  { %1868 = vmatprep.subr.mxu0 %v2132_v0 }
 0x5c1   :  { %1869 = vmatpush3.msra.mxu0 %v2223_v3  ;;  %v233_v9 = vadd.f32 %v1575_v8, %v224_v7 }
 0x5c2   :  { %1870 = vmatprep.subr.mxu0 %v2132_v0 }
 0x5c3   :  { %1871 = vmatpush3.msra.mxu0 %v2229_v4 }
 0x5c4   :  { %1886 = vmatprep.subr.mxu0 %v2132_v0 }
 0x67c   :  { %v653_v13 = vpop.f32.mrf.mxu0 }
 0x67d   :  { %v657_v14 = vadd.f32 %v653_v13, %v303_v12 }
 0x67e   :  { %v1852_v15 = vpop.f32.mrf.mxu0 }
 0x67f   :  { %v658_v16 = vmul.f32 %v657_v14, %v2257_v17 }
 0x681   :  { %1975 = vtanh.f32 %v658_v16 }
 0x68e   :  { %v1976_v18 = vpop.eup %1975 }
 0x68f   :  { %v660_v19 = vmul.f32 %v1976_v18, %v2257_v17 }
 0x691   :  { %v661_v20 = vadd.f32 %v660_v19, %v2260_v23 }
 0x693   :  { %664 = vrot.lane.b32.xlu0 %v661_v20, %s2135_s3  ;;  %v662_v24 = vmul.f32 %v661_v20, %v2295_v57 }
 0x705   :  { %v665_v21 = vpop.permute.xlu0 %664 }
 0x706   :  { %v667_v22 = vmul.f32 %v665_v21, %v661_v20 }
 0x708   :  { %669 = vrot.lane.b32.xlu1 %v667_v22, %s2136_s14 }
 0x77a   :  { %v670_v25 = vpop.permute.xlu1 %669 }
 0x77b   :  { %v2322_v26 = vadd.f32 %v670_v25, %v662_v24 }
 0x77d   :  { %1977 = vtanh.f32 %v2322_v26 }
 0x78a   :  { %v1978_v27 = vpop.eup %1977 }
 0x78b   :  { %675 = vrot.lane.b32.xlu0 %v1978_v27, %s2135_s3 }
 0x7fd   :  { %v676_v28 = vpop.permute.xlu0 %675 }
 0x7fe   :  { %v678_v29 = vmul.f32 %v676_v28, %v661_v20 }
 0x800   :  { %v2327_v30 = vrot.slane %v678_v29, %v2270_v33  ;;  %v1541_v29 = vld [vmem:[%s1430_s26 + $0x8] sm:$0x1] }
 0x802   :  { %684 = vrot.lane.b32.xlu1 %v2327_v30, %s2136_s14 }
 0x874   :  { %v685_v31 = vpop.permute.xlu1 %684 }
 0x875   :  { %1862 = vmatmul.mubr.msk.f32.vlgmr.msra.gmra.mxu1 %vm381_vm4, %v685_v31 }
 0x876   :  { %1876 = vmatpush3.msra.mxu1 %v2216_v1  ;;  %1883 = vmatprep.mubr.msk.f32.mxu1 %vm2133_vm0, %v2132_v0 }
 0x877   :  { %1877 = vmatprep.subr.mxu1 %v2132_v0 }
 0x878   :  { %1878 = vmatpush3.msra.mxu1 %v2218_v2 }
 0x879   :  { %1879 = vmatprep.subr.mxu1 %v2132_v0 }
 0x87a   :  { %1880 = vmatpush3.msra.mxu1 %v2223_v3 }
 0x87b   :  { %1881 = vmatprep.subr.mxu1 %v2132_v0 }
 0x87c   :  { %1882 = vmatpush3.msra.mxu1 %v2229_v4 }
 0x87d   :  { %1897 = vmatprep.subr.mxu1 %v2132_v0 }
 0x935   :  { %v754_v42 = vpop.f32.mrf.mxu1 }
 0x936   :  { %v758_v43 = vadd.f32 %v754_v42, %v268_v41 }
 0x937   :  { %v1863_v44 = vpop.f32.mrf.mxu1 }
 0x938   :  { %v759_v45 = vmul.f32 %v758_v43, %v2257_v17 }
 0x93a   :  { %1979 = vtanh.f32 %v759_v45 }
 0x947   :  { %v1980_v46 = vpop.eup %1979 }
 0x948   :  { %v761_v47 = vmul.f32 %v1980_v46, %v2257_v17 }
 0x94a   :  { %v762_v48 = vadd.f32 %v761_v47, %v2260_v23 }
 0x94c   :  { %765 = vrot.lane.b32.xlu0 %v762_v48, %s2135_s3  ;;  %v763_v51 = vmul.f32 %v762_v48, %v2322_v26 }
 0x9be   :  { %v766_v49 = vpop.permute.xlu0 %765 }
 0x9bf   :  { %v768_v50 = vmul.f32 %v766_v49, %v762_v48 }
 0x9c1   :  { %770 = vrot.lane.b32.xlu1 %v768_v50, %s2136_s14 }
 0xa33   :  { %v771_v52 = vpop.permute.xlu1 %770 }
 0xa34   :  { %v2349_v53 = vadd.f32 %v771_v52, %v763_v51 }
 0xa36   :  { %1981 = vtanh.f32 %v2349_v53 }
 0xa43   :  { %v1982_v54 = vpop.eup %1981 }
 0xa44   :  { %776 = vrot.lane.b32.xlu0 %v1982_v54, %s2135_s3 }
 0xab6   :  { %v777_v55 = vpop.permute.xlu0 %776 }
 0xab7   :  { %v779_v56 = vmul.f32 %v777_v55, %v762_v48  ;;  %v1507_v55 = vld [vmem:[%s1421_s30 + $0x4] sm:$0x1] }
 0xab9   :  { %v2354_v57 = vrot.slane %v779_v56, %v2270_v33 }
 0xabb   :  { %785 = vrot.lane.b32.xlu1 %v2354_v57, %s2136_s14 }
 0xb2d   :  { %v786_v58 = vpop.permute.xlu1 %785 }
 0xb2e   :  { %1873 = vmatmul.mubr.msk.f32.vlgmr.msra.gmra.mxu0 %vm381_vm4, %v786_v58  ;;  %v1514_v58 = vld [vmem:[%s1423_s9 + $0x8] sm:$0x1] }
 0xb2f   :  { %1887 = vmatpush3.msra.mxu0 %v2216_v1  ;;  %1894 = vmatprep.mubr.msk.f32.mxu0 %vm2133_vm0, %v2132_v0 }
 0xb30   :  { %1888 = vmatprep.subr.mxu0 %v2132_v0 }
 0xb31   :  { %1889 = vmatpush3.msra.mxu0 %v2218_v2 }
 0xb32   :  { %1890 = vmatprep.subr.mxu0 %v2132_v0 }
 0xb33   :  { %1891 = vmatpush3.msra.mxu0 %v2223_v3 }
 0xb34   :  { %1892 = vmatprep.subr.mxu0 %v2132_v0 }
 0xb35   :  { %1893 = vmatpush3.msra.mxu0 %v2229_v4 }
 0xb36   :  { %1908 = vmatprep.subr.mxu0 %v2132_v0 }
 0xbee   :  { %v855_v10 = vpop.f32.mrf.mxu0 }
 0xbef   :  { %v859_v11 = vadd.f32 %v855_v10, %v233_v9 }
 0xbf0   :  { %v1874_v12 = vpop.f32.mrf.mxu0 }
 0xbf1   :  { %v860_v13 = vmul.f32 %v859_v11, %v2257_v17 }
 0xbf3   :  { %1983 = vtanh.f32 %v860_v13 }
 0xc00   :  { %v1984_v14 = vpop.eup %1983 }
 0xc01   :  { %v862_v15 = vmul.f32 %v1984_v14, %v2257_v17 }
 0xc03   :  { %v863_v16 = vadd.f32 %v862_v15, %v2260_v23 }
 0xc05   :  { %866 = vrot.lane.b32.xlu0 %v863_v16, %s2135_s3  ;;  %v864_v20 = vmul.f32 %v863_v16, %v2349_v53  ;;  %v135_v53 = vld [vmem:[%s134_s29] sm:$0x1] }
 0xc06   :  { %v136_v54 = vadd.f32 %v135_v53, %v2254_v5  ;;  %v1303_v53 = vld [vmem:[#allocation10 + $0x58] sm:$0xff] }
 0xc08   :  { %v145_v56 = vadd.f32 %v1507_v55, %v136_v54 }
 0xc0a   :  { %v154_v59 = vadd.f32 %v1514_v58, %v145_v56  ;;  %v1302_v56 = vld [vmem:[#allocation10 + $0x50] sm:$0xff] }
 0xc0c   :  { %v163_v62 = vadd.f32 %v1521_v60, %v154_v59  ;;  %v1301_v60 = vld [vmem:[#allocation10 + $0x48] sm:$0xff] }
 0xc77   :  { %v867_v18 = vpop.permute.xlu0 %866 }
 0xc78   :  { %v869_v19 = vmul.f32 %v867_v18, %v863_v16 }
 0xc7a   :  { %871 = vrot.lane.b32.xlu1 %v869_v19, %s2136_s14 }
 0xcec   :  { %v872_v21 = vpop.permute.xlu1 %871 }
 0xced   :  { %v2376_v22 = vadd.f32 %v872_v21, %v864_v20 }
 0xcef   :  { %1985 = vtanh.f32 %v2376_v22 }
 0xcfc   :  { %v1986_v24 = vpop.eup %1985 }
 0xcfd   :  { %877 = vrot.lane.b32.xlu0 %v1986_v24, %s2135_s3 }
 0xd6f   :  { %v878_v25 = vpop.permute.xlu0 %877 }
 0xd70   :  { %v880_v26 = vmul.f32 %v878_v25, %v863_v16  ;;  %v1480_v25 = vld [vmem:[%s1414_s16 + $0x4] sm:$0x1] }
 0xd72   :  { %v2381_v27 = vrot.slane %v880_v26, %v2270_v33 }
 0xd74   :  { %886 = vrot.lane.b32.xlu1 %v2381_v27, %s2136_s14 }
 0xde6   :  { %v887_v28 = vpop.permute.xlu1 %886 }
 0xde7   :  { %1884 = vmatmul.mubr.msk.f32.vlgmr.msra.gmra.mxu1 %vm381_vm4, %v887_v28  ;;  %v1487_v28 = vld [vmem:[%s1416_s17 + $0x8] sm:$0x1] }
 0xde8   :  { %1898 = vmatpush3.msra.mxu1 %v2216_v1  ;;  %1905 = vmatprep.mubr.msk.f32.mxu1 %vm2133_vm0, %v2132_v0  ;;  %v170_v1 = vld [vmem:[%s169_s2] sm:$0x1] }
 0xde9   :  { %1899 = vmatprep.subr.mxu1 %v2132_v0 }
 0xdea   :  { %1900 = vmatpush3.msra.mxu1 %v2218_v2  ;;  %v171_v2 = vadd.f32 %v170_v1, %v2254_v5 }
 0xdeb   :  { %1901 = vmatprep.subr.mxu1 %v2132_v0 }
 0xdec   :  { %1902 = vmatpush3.msra.mxu1 %v2223_v3  ;;  %v1534_v3 = vld [vmem:[%s1428_s25 + $0x4] sm:$0x1] }
 0xded   :  { %1903 = vmatprep.subr.mxu1 %v2132_v0 }
 0xdee   :  { %1904 = vmatpush3.msra.mxu1 %v2229_v4  ;;  %v180_v4 = vadd.f32 %v1534_v3, %v171_v2  ;;  %v1494_v2 = vld [vmem:[%s1418_s18 + $0xc] sm:$0x1] }
 0xdef   :  { %1919 = vmatprep.subr.mxu1 %v2132_v0 }
 0xdf0   :  { %v189_v31 = vadd.f32 %v1541_v29, %v180_v4 }
 0xdf2   :  { %v198_v34 = vadd.f32 %v1548_v32, %v189_v31 }
 0xea7   :  { %v956_v35 = vpop.f32.mrf.mxu1 }
 0xea8   :  { %v960_v37 = vadd.f32 %v956_v35, %v198_v34 }
 0xea9   :  { %v1885_v38 = vpop.f32.mrf.mxu1 }
 0xeaa   :  { %v961_v39 = vmul.f32 %v960_v37, %v2257_v17 }
 0xeac   :  { %1987 = vtanh.f32 %v961_v39 }
 0xeb9   :  { %v1988_v40 = vpop.eup %1987 }
 0xeba   :  { %v963_v41 = vmul.f32 %v1988_v40, %v2257_v17 }
 0xebc   :  { %v964_v42 = vadd.f32 %v963_v41, %v2260_v23 }
 0xebe   :  { %967 = vrot.lane.b32.xlu0 %v964_v42, %s2135_s3  ;;  %v965_v45 = vmul.f32 %v964_v42, %v2376_v22 }
 0xf30   :  { %v968_v43 = vpop.permute.xlu0 %967 }
 0xf31   :  { %v970_v44 = vmul.f32 %v968_v43, %v964_v42  ;;  %v1207_v43 = vld [vmem:[#allocation9 + $0x10] sm:$0xff] }
 0xf33   :  { %972 = vrot.lane.b32.xlu1 %v970_v44, %s2136_s14  ;;  %v1206_v44 = vld [vmem:[#allocation9 + $0x8] sm:$0xff] }
 0xfa5   :  { %v973_v46 = vpop.permute.xlu1 %972 }
 0xfa6   :  { %v975_v47 = vadd.f32 %v973_v46, %v965_v45  ;;  %v1306_v46 = vld [vmem:[#allocation10 + $0x70] sm:$0xff] }
 0xfa8   :  { %1989 = vtanh.f32 %v975_v47 }
 0xfb5   :  { %v1990_v48 = vpop.eup %1989 }
 0xfb6   :  { %978 = vrot.lane.b32.xlu0 %v1990_v48, %s2135_s3 }
0x1028   :  { %v979_v49 = vpop.permute.xlu0 %978 }
0x1029   :  { %v981_v50 = vmul.f32 %v979_v49, %v964_v42  ;;  %v1208_v42 = vld [vmem:[#allocation9 + $0x18] sm:$0xff] }
0x102b   :  { %v2405_v51 = vrot.slane %v981_v50, %v2270_v33  ;;  %v1304_v50 = vld [vmem:[#allocation10 + $0x60] sm:$0xff] }
0x102d   :  { %987 = vrot.lane.b32.xlu1 %v2405_v51, %s2136_s14 }
0x109f   :  { %v988_v52 = vpop.permute.xlu1 %987 }
0x10a0   :  { %1895 = vmatmul.mubr.msk.f32.vlgmr.msra.gmra.mxu0 %vm381_vm4, %v988_v52 }
0x10a1   :  { %1916 = vmatprep.mubr.msk.f32.mxu0 %vm2133_vm0, %v2132_v0  ;;  %1909 = vmatpush3.msra.mxu0 %v1208_v42 }
0x10a2   :  { %1910 = vmatprep.subr.mxu0 %v2132_v0 }
0x10a3   :  { %1911 = vmatpush3.msra.mxu0 %v1207_v43 }
0x10a4   :  { %1912 = vmatprep.subr.mxu0 %v2132_v0 }
0x10a5   :  { %1913 = vmatpush3.msra.mxu0 %v1206_v44 }
0x10a6   :  { %1914 = vmatprep.subr.mxu0 %v2132_v0 }
0x1160   :  { %v1057_v63 = vpop.f32.mrf.mxu0 }
0x1161   :  { %v1061_v6 = vadd.f32 %v1057_v63, %v163_v62  ;;  %v1295_v63 = vld [vmem:[#allocation10 + $0x18] sm:$0xff] }
0x1162   :  { %v1896_v7 = vpop.f32.mrf.mxu0 }
0x1163   :  { %v1062_v8 = vmul.f32 %v1061_v6, %v2257_v17  ;;  %v1294_v7 = vld [vmem:[#allocation10 + $0x10] sm:$0xff] }
0x1165   :  { %1991 = vtanh.f32 %v1062_v8  ;;  %v1293_v8 = vld [vmem:[#allocation10 + $0x8] sm:$0xff] }
0x1172   :  { %v1992_v9 = vpop.eup %1991 }
0x1173   :  { %v1064_v10 = vmul.f32 %v1992_v9, %v2257_v17  ;;  %v1292_v9 = vld [vmem:[#allocation10] sm:$0xff] }
0x1175   :  { %v1065_v11 = vadd.f32 %v1064_v10, %v2260_v23  ;;  %v1691_v10 = vld [vmem:[%s2475_s5] ss:$0 sm:$0xff]  ;;  %s2137_s5 = smov [#allocation12]  }
0x1176   :  { %s1402_s21 = sshll.u32 %s2137_s5, 4  ;;  %s1403_s21 = int_to_ptr.vmem [resolvable:$true] %s1402_s21 }
0x1177   :  { %1068 = vrot.lane.b32.xlu0 %v1065_v11, %s2135_s3  ;;  %v1066_v14 = vmul.f32 %v1065_v11, %v975_v47  ;;  %v1305_v47 = vld [vmem:[#allocation10 + $0x68] sm:$0xff]  ;;  %p2100_p6 = scmp.lt.s32.totalorder %s1403_s21, %s1403_s21 }
0x11e9   :  { %v1069_v12 = vpop.permute.xlu0 %1068 }
0x11ea   :  { %v1071_v13 = vmul.f32 %v1069_v12, %v1065_v11 }
0x11ec   :  { %1073 = vrot.lane.b32.xlu1 %v1071_v13, %s2136_s14 }
0x125e   :  { %v1074_v15 = vpop.permute.xlu1 %1073 }
0x125f   :  { %v1076_v16 = vadd.f32 %v1074_v15, %v1066_v14  ;;  %v1693_v15 = vld [vmem:[%s2477_s7] ss:$0 sm:$0xff]  ;;  %s2095_s7 = scalar_lea.vmem %s1403_s21, 128 }
0x1260   :  { %p2096_p5 = scmp.ne.s32.totalorder %s1403_s21, %s2095_s7  ;;  %p2101_p7 = scmp.lt.s32.totalorder %s2095_s7, %s2095_s7 }
0x1261   :  { %1993 = vtanh.f32 %v1076_v16 }
0x1262   :  { %p2102_p8 = por %p2101_p7, %p2100_p6 }
0x1264   :  { %p2103_p9 = pnand %p2102_p8, %p2096_p5 }
0x126e   :  { %v1994_v18 = vpop.eup %1993 }
0x126f   :  { %1079 = vrot.lane.b32.xlu0 %v1994_v18, %s2135_s3 }
0x12e1   :  { %v1080_v19 = vpop.permute.xlu0 %1079 }
0x12e2   :  { %v1082_v20 = vmul.f32 %v1080_v19, %v1065_v11 }
0x12e4   :  { %v2420_v21 = vrot.slane %v1082_v20, %v2270_v33  ;;  %v100_v33 = vld [vmem:[%s99_s15] sm:$0x1] }
0x12e5   :  { %v101_v24 = vadd.f32 %v100_v33, %v2254_v5 }
0x12e6   :  { %1088 = vrot.lane.b32.xlu1 %v2420_v21, %s2136_s14 }
0x12e7   :  { %v110_v26 = vadd.f32 %v1480_v25, %v101_v24 }
0x12e9   :  { %v119_v1 = vadd.f32 %v1487_v28, %v110_v26 }
0x12eb   :  { %v128_v3 = vadd.f32 %v1494_v2, %v119_v1 }
0x1358   :  { %v1089_v22 = vpop.permute.xlu1 %1088 }
0x1359   :  { %1906 = vmatmul.mubr.msk.f32.vlgmr.msra.gmra.mxu1 %vm381_vm4, %v1089_v22 }
0x135a   :  { %1951 = vmatprep.mubr.msk.f32.mxu1 %vm2133_vm0, %v2132_v0 }
0x1419   :  { %v1158_v4 = vpop.f32.mrf.mxu1 }
0x141a   :  { %v1162_v29 = vadd.f32 %v1158_v4, %v128_v3 }
0x141b   :  { %v1907_v31 = vpop.f32.mrf.mxu1 }
0x141c   :  { %v1163_v32 = vmul.f32 %v1162_v29, %v2257_v17 }
0x141e   :  { %1995 = vtanh.f32 %v1163_v32 }
0x142b   :  { %v1996_v34 = vpop.eup %1995 }
0x142c   :  { %v1165_v35 = vmul.f32 %v1996_v34, %v2257_v17  ;;  %v1205_v17 = vld [vmem:[#allocation9] sm:$0xff] }
0x142d   :  { %1915 = vmatpush3.msra.mxu0 %v1205_v17 }
0x142e   :  { %v1166_v5 = vadd.f32 %v1165_v35, %v2260_v23  ;;  %v1307_v23 = vld [vmem:[#allocation10 + $0x78] sm:$0xff] }
0x142f   :  { %1920 = vmatpush3.msra.mxu1 %v1307_v23 }
0x1430   :  { %1169 = vrot.lane.b32.xlu0 %v1166_v5, %s2135_s3  ;;  %v1167_v39 = vmul.f32 %v1166_v5, %v1076_v16  ;;  %1921 = vmatprep.subr.mxu1 %v2132_v0 }
0x1431   :  { %1922 = vmatpush3.msra.mxu1 %v1306_v46 }
0x1432   :  { %1923 = vmatprep.subr.mxu1 %v2132_v0 }
0x1433   :  { %1924 = vmatpush3.msra.mxu1 %v1305_v47 }
0x1434   :  { %1925 = vmatprep.subr.mxu1 %v2132_v0 }
0x1435   :  { %1926 = vmatpush3.msra.mxu1 %v1304_v50 }
0x1436   :  { %1927 = vmatprep.subr.mxu1 %v2132_v0 }
0x1437   :  { %1928 = vmatpush3.msra.mxu1 %v1303_v53 }
0x1438   :  { %1929 = vmatprep.subr.mxu1 %v2132_v0 }
0x1439   :  { %1930 = vmatpush3.msra.mxu1 %v1302_v56 }
0x143a   :  { %1931 = vmatprep.subr.mxu1 %v2132_v0 }
0x143b   :  { %1932 = vmatpush3.msra.mxu1 %v1301_v60 }
0x143c   :  { %1933 = vmatprep.subr.mxu1 %v2132_v0 }
0x14a2   :  { %v1170_v37 = vpop.permute.xlu0 %1169 }
0x14a3   :  { %v1172_v38 = vmul.f32 %v1170_v37, %v1166_v5 }
0x14a5   :  { %1174 = vrot.lane.b32.xlu1 %v1172_v38, %s2136_s14 }
0x1517   :  { %v1175_v40 = vpop.permute.xlu1 %1174 }
0x1518   :  { %v1177_v41 = vadd.f32 %v1175_v40, %v1167_v39 }
0x151a   :  { %1997 = vtanh.f32 %v1177_v41 }
0x1527   :  { %v1998_v45 = vpop.eup %1997 }
0x1528   :  { %1180 = vrot.lane.b32.xlu0 %v1998_v45, %s2135_s3 }
0x159a   :  { %v1181_v48 = vpop.permute.xlu0 %1180 }
0x159b   :  { %v1183_v49 = vmul.f32 %v1181_v48, %v1166_v5 }
0x159d   :  { %v1192_v52 = vsel %vm1191_vm5, %v1183_v49, %v2420_v21 }
0x159e   :  { %v1194_v54 = vsel %vm1193_vm6, %v1192_v52, %v2405_v51 }
0x159f   :  { %v1196_v55 = vsel %vm1195_vm7, %v1194_v54, %v2381_v27  ;;  %v1300_v27 = vld [vmem:[#allocation10 + $0x40] sm:$0xff] }
0x15a0   :  { %v1198_v58 = vsel %vm1197_vm8, %v1196_v55, %v2354_v57  ;;  %v1299_v57 = vld [vmem:[#allocation10 + $0x38] sm:$0xff]  ;;  %1934 = vmatpush3.msra.mxu1 %v1300_v27 }
0x15a1   :  { %v1200_v59 = vsel %vm1199_vm9, %v1198_v58, %v2327_v30  ;;  %1935 = vmatprep.subr.mxu1 %v2132_v0  ;;  %v1298_v30 = vld [vmem:[#allocation10 + $0x30] sm:$0xff] }
0x15a2   :  { %v1202_v62 = vsel %vm1201_vm10, %v1200_v59, %v2300_v61  ;;  %1936 = vmatpush3.msra.mxu1 %v1299_v57  ;;  %v1297_v61 = vld [vmem:[#allocation10 + $0x28] sm:$0xff] }
0x15a3   :  { %v1204_v51 = vsel %vm1203_vm11, %v1202_v62, %v2273_v36  ;;  %1937 = vmatprep.subr.mxu1 %v2132_v0  ;;  %v1296_v36 = vld [vmem:[#allocation10 + $0x20] sm:$0xff] }
0x15a4   :  { %1217 = vrot.lane.b32.xlu1 %v1204_v51, %s2136_s14  ;;  %1938 = vmatpush3.msra.mxu1 %v1298_v30 }
0x15a5   :  { %1939 = vmatprep.subr.mxu1 %v2132_v0 }
0x15a6   :  { %1940 = vmatpush3.msra.mxu1 %v1297_v61 }
0x15a7   :  { %1941 = vmatprep.subr.mxu1 %v2132_v0 }
0x15a8   :  { %1942 = vmatpush3.msra.mxu1 %v1296_v36 }
0x15a9   :  { %1943 = vmatprep.subr.mxu1 %v2132_v0 }
0x15aa   :  { %1944 = vmatpush3.msra.mxu1 %v1295_v63 }
0x15ab   :  { %1945 = vmatprep.subr.mxu1 %v2132_v0 }
0x15ac   :  { %1946 = vmatpush3.msra.mxu1 %v1294_v7 }
0x15ad   :  { %1947 = vmatprep.subr.mxu1 %v2132_v0 }
0x15ae   :  { %1948 = vmatpush3.msra.mxu1 %v1293_v8 }
0x15af   :  { %1949 = vmatprep.subr.mxu1 %v2132_v0 }
0x15b0   :  { %1950 = vmatpush3.msra.mxu1 %v1292_v9 }
0x1616   :  { %v1218_v6 = vpop.permute.xlu1 %1217 }
0x1617   :  { %1917 = vmatmul.mubr.msk.f32.vlgmr.msra.gmra.mxu0 %vm381_vm4, %v1218_v6 }
0x16d7   :  { %v1287_v11 = vpop.f32.mrf.mxu0 }
0x16d8   :  { %v1288_v12 = vadd.f32 %v1691_v10, %v1287_v11 }
0x16d9   :  { %v1918_v13 = vpop.f32.mrf.mxu0 }
0x16da   :  { %v1291_v14 = vmax.f32 %v1288_v12, 0.0 }
0x16dc   :  { %1952 = vmatmul.mubr.f32.vlgmr.msra.gmra.mxu1 %v1291_v14 }
0x179c   :  { %v1381_v16 = vpop.f32.mrf.mxu1 }
0x179d   :  { %v1382_v18 = vadd.f32 %v1693_v15, %v1381_v16 }
0x179e   :  { %v1953_v19 = vpop.f32.mrf.mxu1 }
0x179f   :  { %1385 = vmax.xlane.f32.xlu0 %v1382_v18 }
0x1828   :  { %v1386_v0 = vpop.xlane.xlu0 %1385 }
0x1829   :  { %v1387_v20 = vsub.f32 %v1382_v18, %v1386_v0 }
0x182b   :  { %v1388_v21 = vmul.f32 1.442695, %v1387_v20 }
0x182d   :  { %1999 = vpow2.f32 %v1388_v21 }
0x183a   :  { %v2000_v22 = vpop.eup %1999 }
0x183b   :  { %1390 = vadd.xlane.f32.xlu1 %v2000_v22 }
0x18c4   :  { %v1391_v33 = vpop.xlane.xlu1 %1390 }
0x18c5   :  { %2001 = vlog2.f32 %v1391_v33 }
0x18d2   :  { %v2002_v24 = vpop.eup %2001 }
0x18d3   :  { %v1393_v25 = vmul.f32 0.6931472, %v2002_v24 }
0x18d5   :  { %v1394_v26 = vsub.f32 %v1387_v20, %v1393_v25 }
0x18d7   :  { %1395 = vst [vmem:[#allocation12] sm:$0xff] %v1394_v26 }
0x18d8   :  { %2106 = shalt.err (!%p2103_p9)
}
0x18d9   :  { %1405 = dma.vmem_to_hbm [thread:$0]  %s1403_s21, 128, %s2478_s8, [#allocation6]  }
0x18da   :  { %2123 = dma.done.wait [#allocation6], 128  }
0x18db   :  { %2124 = vsyncadd [#allocation6], 4294967168 }
0x18dc   :  { %1409 = vsyncpa [#allocation5], 1 }
0x18dd   :  { %1410 = vsyncpa [#allocation8], 1 }
0x18de   :  { %1411 = vsyncpa [#allocation11], 1 }
0x18df   :  { %1412 = vsyncpa [#allocation6], 1 }

</bundles_post_ra>
